<compile_context>
chip_gen: v7x
topology: tpu7x:2x2x1
jax: 0.10.0
libtpu: 0.0.40
codegen_flags: <defaults>
</compile_context>

<pallas_src>
import numpy as np

import jax
import jax.numpy as jnp
from jax import lax
from jax.experimental import pallas as pl
from jax.experimental.pallas import tpu as pltpu


# ------------------------------ Pallas kernel ------------------------------ #
def _leaky(v):
    return jnp.where(v >= 0, v, 0.2 * v)


def _encoder_kernel(x_ref, m1_ref, m2_ref, shift2_ref, m3_ref, o_ref):
    # One batch block per grid step; three dense MXU matmuls, everything
    # in between stays in VMEM/vregs.
    x = x_ref[...]                                              # (B, 1024)
    a1 = _leaky(jnp.dot(x, m1_ref[...],
                        preferred_element_type=jnp.float32))    # (B, 512)
    a2 = _leaky(jnp.dot(a1, m2_ref[...],
                        preferred_element_type=jnp.float32)
                + shift2_ref[...])                              # (B, 256)
    y = jnp.dot(a2, m3_ref[...],
                preferred_element_type=jnp.float32)             # (B, nz_pad)
    o_ref[...] = y.astype(o_ref.dtype)


# ------------------------------- JAX wrapper -------------------------------- #
def _round_up(a, b):
    return (a + b - 1) // b * b


def _tap_index_map(in_h, in_w, k, stride, pad):
    """Static host-side map: tap_idx[out_pix, in_pix] = kernel tap feeding that
    (input pixel -> output pixel) pair, or k*k (sentinel = zero tap / padding).
    At most one tap connects a given pair, so the dense fold below is exact."""
    out_h = (in_h + 2 * pad - k) // stride + 1
    out_w = (in_w + 2 * pad - k) // stride + 1
    idx = np.full((out_h * out_w, in_h * in_w), k * k, np.int32)
    for oh in range(out_h):
        for ow in range(out_w):
            for dh in range(k):
                ih = oh * stride - pad + dh
                if not (0 <= ih < in_h):
                    continue
                for dw in range(k):
                    iw = ow * stride - pad + dw
                    if 0 <= iw < in_w:
                        idx[oh * out_w + ow, ih * in_w + iw] = dh * k + dw
    return idx, out_h, out_w


def _conv_as_dense(w_oihw, tap_idx):
    """Fold a conv into one dense matrix M of shape (in_hw*IC, out_hw*OC) such
    that (x flattened NHWC) @ M == conv(x) flattened NHWC.  Built by a pure
    gather (jnp.take) of per-tap weight slices -> bit-exact in f32."""
    oc, ic, kh, kw = w_oihw.shape
    out_hw, in_hw = tap_idx.shape
    w_tap = jnp.transpose(w_oihw, (2, 3, 1, 0)).reshape(kh * kw, ic, oc)
    w_tap = jnp.concatenate(
        [w_tap, jnp.zeros((1, ic, oc), w_tap.dtype)], axis=0)   # sentinel tap
    m = jnp.take(w_tap, jnp.asarray(tap_idx), axis=0)           # (out_hw,in_hw,ic,oc)
    m = jnp.transpose(m, (1, 2, 0, 3))                          # (in_hw,ic,out_hw,oc)
    return m.reshape(in_hw * ic, out_hw * oc)


def encoder_forward(x_nchw, params):
    """Input NCHW (N, nc, 16, 16); returns NCHW (N, nz, 1, 1)."""
    n, c, h, w = x_nchw.shape
    ndf = params["w1"].shape[0]
    nz = params["w3"].shape[0]

    # NCHW -> NHWC -> lane-dense (N, H*W*C) = (N, 1024).
    x_flat = jnp.transpose(x_nchw, (0, 2, 3, 1)).reshape(n, h * w * c)
    x_flat = x_flat.astype(jnp.float32)

    # Static conv geometry (built once on the host).
    idx1, h1, w1s = _tap_index_map(h, w, 4, 2, 1)       # 16x16 -> 8x8
    idx2, h2, w2s = _tap_index_map(h1, w1s, 4, 2, 1)    # 8x8  -> 4x4
    idx3, h3, w3s = _tap_index_map(h2, w2s, 4, 1, 0)    # 4x4  -> 1x1
    assert (h3, w3s) == (1, 1)

    # Fold inference-mode BN into the layer-2 weights (scale) + a shift vector.
    eps = 1e-5
    scale2 = params["bn2_gamma"] / jnp.sqrt(params["bn2_var"] + eps)
    shift2 = params["bn2_beta"] - params["bn2_mean"] * scale2
    w2_scaled = params["w2"] * scale2[:, None, None, None]

    # Dense per-layer matrices (exact fold of gather + weights).
    m1 = _conv_as_dense(params["w1"], idx1)             # (1024, 512)
    m2 = _conv_as_dense(w2_scaled, idx2)                # (512, 256)
    m3 = _conv_as_dense(params["w3"], idx3)             # (256, nz)

    d2 = m2.shape[1]                                    # out_hw2 * 2ndf
    shift2_flat = jnp.broadcast_to(
        shift2[None, :], (h2 * w2s, 2 * ndf)).reshape(1, d2)

    # Pad nz to a full 128-lane slab so the output store is unmasked.
    nz_pad = _round_up(max(nz, 128), 128)
    if nz_pad > nz:
        m3 = jnp.pad(m3, ((0, 0), (0, nz_pad - nz)))

    # Batch blocking: multiple-of-8 sublane blocks; whole batch in one grid
    # step for small N.  Keeps VMEM well inside the default budget on v7x too.
    b_blk = min(256, _round_up(n, 8))
    n_pad = _round_up(n, b_blk)
    if n_pad > n:
        x_flat = jnp.pad(x_flat, ((0, n_pad - n), (0, 0)))

    in_dim = h * w * c

    out = pl.pallas_call(
        _encoder_kernel,
        out_shape=jax.ShapeDtypeStruct((n_pad, nz_pad), jnp.float32),
        grid=(n_pad // b_blk,),
        in_specs=[
            pl.BlockSpec((b_blk, in_dim), lambda i: (i, 0)),    # input block
            pl.BlockSpec(m1.shape, lambda i: (0, 0)),           # resident weights
            pl.BlockSpec(m2.shape, lambda i: (0, 0)),
            pl.BlockSpec(shift2_flat.shape, lambda i: (0, 0)),
            pl.BlockSpec(m3.shape, lambda i: (0, 0)),
        ],
        out_specs=pl.BlockSpec((b_blk, nz_pad), lambda i: (i, 0)),
        compiler_params=pltpu.CompilerParams(
            dimension_semantics=("parallel",),
        ),
    )(x_flat, m1, m2, shift2_flat, m3)

    return out[:n, :nz].reshape(n, nz, 1, 1)


# ---------------------------- Pure-JAX reference ---------------------------- #
def encoder_reference(x_nchw, params):
    dn = ("NCHW", "OIHW", "NCHW")
    hp = lax.Precision.HIGHEST

    def lrelu(v):
        return jnp.where(v >= 0, v, 0.2 * v)

    y = lax.conv_general_dilated(x_nchw, params["w1"], (2, 2), [(1, 1), (1, 1)],
                                 dimension_numbers=dn, precision=hp)
    y = lrelu(y)
    y = lax.conv_general_dilated(y, params["w2"], (2, 2), [(1, 1), (1, 1)],
                                 dimension_numbers=dn, precision=hp)
    eps = 1e-5
    scale2 = params["bn2_gamma"] / jnp.sqrt(params["bn2_var"] + eps)
    shift2 = params["bn2_beta"] - params["bn2_mean"] * scale2
    y = y * scale2[None, :, None, None] + shift2[None, :, None, None]
    y = lrelu(y)
    y = lax.conv_general_dilated(y, params["w3"], (1, 1), [(0, 0), (0, 0)],
                                 dimension_numbers=dn, precision=hp)
    return y


# ----------------------------------- main ----------------------------------- #
if __name__ == "__main__":
    batch, nc, isize = 2, 4, 16
    ndf, nz = 8, 16

    key = jax.random.PRNGKey(0)
    k_x, k_w1, k_w2, k_w3, k_g, k_b, k_m, k_v = jax.random.split(key, 8)

    x = jax.random.normal(k_x, (batch, nc, isize, isize), jnp.float32)

    params = {
        # DCGAN-style deterministic init: N(0, 0.02)
        "w1": 0.02 * jax.random.normal(k_w1, (ndf, nc, 4, 4), jnp.float32),
        "w2": 0.02 * jax.random.normal(k_w2, (2 * ndf, ndf, 4, 4), jnp.float32),
        "w3": 0.02 * jax.random.normal(k_w3, (nz, 2 * ndf, 4, 4), jnp.float32),
        # BatchNorm2d(2*ndf) params / running stats (inference mode)
        "bn2_gamma": 1.0 + 0.02 * jax.random.normal(k_g, (2 * ndf,), jnp.float32),
        "bn2_beta": 0.02 * jax.random.normal(k_b, (2 * ndf,), jnp.float32),
        "bn2_mean": 0.01 * jax.random.normal(k_m, (2 * ndf,), jnp.float32),
        "bn2_var": 1.0 + 0.05 * jnp.abs(jax.random.normal(k_v, (2 * ndf,), jnp.float32)),
    }

    fwd = jax.jit(encoder_forward)
    out = jax.block_until_ready(fwd(x, params))
    assert out.shape == (batch, nz, 1, 1), out.shape

    ref = jax.block_until_ready(encoder_reference(x, params))
    max_err = float(jnp.max(jnp.abs(out - ref)))
    assert jnp.allclose(out, ref, rtol=5e-3, atol=5e-4), max_err

    print("KERNEL_OK")
</pallas_src>

<mosaic_0001>
module attributes {stable_mosaic.version = 11 : i64} {
  func.func @_encoder_kernel(%arg0: i32, %arg1: memref<8x1024xf32, #tpu.memory_space<vmem>>, %arg2: memref<1024x512xf32, #tpu.memory_space<vmem>>, %arg3: memref<512x256xf32, #tpu.memory_space<vmem>>, %arg4: memref<1x256xf32, #tpu.memory_space<vmem>>, %arg5: memref<256x128xf32, #tpu.memory_space<vmem>>, %arg6: memref<8x128xf32, #tpu.memory_space<vmem>>) attributes {dimension_semantics = [#tpu.dimension_semantics<parallel>], iteration_bounds = array<i64: 1>, scalar_prefetch = 0 : i64, scratch_operands = 0 : i64, tpu.core_type = #tpu.core_type<tc>, window_params = [{transform_indices = @transform_0, window_bounds = array<i64: 8, 1024>}, {pipeline_mode = #tpu.pipeline_mode<synchronous>, transform_indices = @transform_1, window_bounds = array<i64: 1024, 512>}, {pipeline_mode = #tpu.pipeline_mode<synchronous>, transform_indices = @transform_2, window_bounds = array<i64: 512, 256>}, {pipeline_mode = #tpu.pipeline_mode<synchronous>, transform_indices = @transform_3, window_bounds = array<i64: 1, 256>}, {pipeline_mode = #tpu.pipeline_mode<synchronous>, transform_indices = @transform_4, window_bounds = array<i64: 256, 128>}, {transform_indices = @transform_5, window_bounds = array<i64: 8, 128>}]} {
    %c0 = arith.constant 0 : index
    %c0_0 = arith.constant 0 : index
    %0 = vector.load %arg1[%c0, %c0_0] : memref<8x1024xf32, #tpu.memory_space<vmem>>, vector<8x1024xf32>
    %c0_1 = arith.constant 0 : index
    %c0_2 = arith.constant 0 : index
    %1 = vector.load %arg2[%c0_1, %c0_2] : memref<1024x512xf32, #tpu.memory_space<vmem>>, vector<1024x512xf32>
    %cst = arith.constant dense<0.000000e+00> : vector<8x512xf32>
    %2 = tpu.matmul %0, %1, %cst {dimension_numbers = #tpu.dot_dimension_numbers<[1], [0], [0], [1], [0, 0, 1, 1], [], []>} : vector<8x1024xf32>, vector<1024x512xf32>, vector<8x512xf32> -> vector<8x512xf32>
    %cst_3 = arith.constant 0.000000e+00 : f32
    %3 = vector.broadcast %cst_3 : f32 to vector<8x512xf32>
    %4 = arith.cmpf oge, %2, %3 : vector<8x512xf32>
    %cst_4 = arith.constant 2.000000e-01 : f32
    %5 = vector.broadcast %cst_4 : f32 to vector<8x512xf32>
    %6 = arith.mulf %5, %2 : vector<8x512xf32>
    %7 = arith.select %4, %2, %6 : vector<8x512xi1>, vector<8x512xf32>
    %c0_5 = arith.constant 0 : index
    %c0_6 = arith.constant 0 : index
    %8 = vector.load %arg3[%c0_5, %c0_6] : memref<512x256xf32, #tpu.memory_space<vmem>>, vector<512x256xf32>
    %cst_7 = arith.constant dense<0.000000e+00> : vector<8x256xf32>
    %9 = tpu.matmul %7, %8, %cst_7 {dimension_numbers = #tpu.dot_dimension_numbers<[1], [0], [0], [1], [0, 0, 1, 1], [], []>} : vector<8x512xf32>, vector<512x256xf32>, vector<8x256xf32> -> vector<8x256xf32>
    %c0_8 = arith.constant 0 : index
    %c0_9 = arith.constant 0 : index
    %10 = vector.load %arg4[%c0_8, %c0_9] : memref<1x256xf32, #tpu.memory_space<vmem>>, vector<1x256xf32>
    %11 = vector.broadcast %10 : vector<1x256xf32> to vector<8x256xf32>
    %12 = arith.addf %9, %11 : vector<8x256xf32>
    %cst_10 = arith.constant 0.000000e+00 : f32
    %13 = vector.broadcast %cst_10 : f32 to vector<8x256xf32>
    %14 = arith.cmpf oge, %12, %13 : vector<8x256xf32>
    %cst_11 = arith.constant 2.000000e-01 : f32
    %15 = vector.broadcast %cst_11 : f32 to vector<8x256xf32>
    %16 = arith.mulf %15, %12 : vector<8x256xf32>
    %17 = arith.select %14, %12, %16 : vector<8x256xi1>, vector<8x256xf32>
    %c0_12 = arith.constant 0 : index
    %c0_13 = arith.constant 0 : index
    %18 = vector.load %arg5[%c0_12, %c0_13] : memref<256x128xf32, #tpu.memory_space<vmem>>, vector<256x128xf32>
    %cst_14 = arith.constant dense<0.000000e+00> : vector<8x128xf32>
    %19 = tpu.matmul %17, %18, %cst_14 {dimension_numbers = #tpu.dot_dimension_numbers<[1], [0], [0], [1], [0, 0, 1, 1], [], []>} : vector<8x256xf32>, vector<256x128xf32>, vector<8x128xf32> -> vector<8x128xf32>
    %c0_15 = arith.constant 0 : index
    %c0_16 = arith.constant 0 : index
    %20 = vector.load %arg6[%c0_15, %c0_16] : memref<8x128xf32, #tpu.memory_space<vmem>>, vector<8x128xf32>
    tpu.vector_store %arg6[%c0_15, %c0_16], %19 {strides = array<i32>} : memref<8x128xf32, #tpu.memory_space<vmem>>, vector<8x128xf32>,
    return
  }
  func.func @transform_0(%arg0: i32) -> (i32, i32) {
    %c0_i32 = arith.constant 0 : i32
    %c0_i32_0 = arith.constant 0 : i32
    return %arg0, %c0_i32 : i32, i32
  }
  func.func @transform_1(%arg0: i32) -> (i32, i32) {
    %c0_i32 = arith.constant 0 : i32
    %c0_i32_0 = arith.constant 0 : i32
    %c0_i32_1 = arith.constant 0 : i32
    return %c0_i32, %c0_i32_0 : i32, i32
  }
  func.func @transform_2(%arg0: i32) -> (i32, i32) {
    %c0_i32 = arith.constant 0 : i32
    %c0_i32_0 = arith.constant 0 : i32
    %c0_i32_1 = arith.constant 0 : i32
    return %c0_i32, %c0_i32_0 : i32, i32
  }
  func.func @transform_3(%arg0: i32) -> (i32, i32) {
    %c0_i32 = arith.constant 0 : i32
    %c0_i32_0 = arith.constant 0 : i32
    %c0_i32_1 = arith.constant 0 : i32
    return %c0_i32, %c0_i32_0 : i32, i32
  }
  func.func @transform_4(%arg0: i32) -> (i32, i32) {
    %c0_i32 = arith.constant 0 : i32
    %c0_i32_0 = arith.constant 0 : i32
    %c0_i32_1 = arith.constant 0 : i32
    return %c0_i32, %c0_i32_0 : i32, i32
  }
  func.func @transform_5(%arg0: i32) -> (i32, i32) {
    %c0_i32 = arith.constant 0 : i32
    %c0_i32_0 = arith.constant 0 : i32
    return %arg0, %c0_i32 : i32, i32
  }
}

</mosaic_0001>

<bundles_post_ra>
// kernel: encoder_forward.1
= control target key start
LH: loop header
LB: loop body
LE: loop exit
PB: predicated region body
PF: predicated region fallthrough
CT: control target
= control target key end

     0   :  { %10 = vsyncpa [#allocation3], 0  ;;  %s2905_s0 = inlined_call_operand.hbm [shape: f32[8,1024], index: 0, kind: input, shape index: {}]   ;;  %s2906_s1 = inlined_call_operand.hbm [shape: f32[1024,512], index: 1, kind: input, shape index: {}]   ;;  %s2907_s2 = inlined_call_operand.vmem [shape: f32[512,256], index: 2, kind: input, shape index: {}]   ;;  %s2908_s3 = inlined_call_operand.vmem [shape: f32[1,256], index: 3, kind: input, shape index: {}]   ;;  %s2909_s4 = inlined_call_operand.vmem [shape: f32[256,128], index: 4, kind: input, shape index: {}]   ;;  %s2910_s5 = inlined_call_operand.vmem [shape: f32[8,128], index: 5, kind: output, shape index: {}]  }
   0x1   :  { %11 = vsyncpa [#allocation5], 0  ;;  %s2319_s18 = smov [#allocation2]   ;;  %s2320_s20 = smov [#allocation4]  }
   0x2   :  { %s18_s19 = sshll.u32 %s2319_s18, 4  ;;  %s27_s21 = sshll.u32 %s2320_s20, 4  ;;  %s19_s19 = int_to_ptr.vmem [resolvable:$true] %s18_s19  ;;  %s2353_s21 = int_to_ptr.vmem [resolvable:$true] %s27_s21 }
   0x3   :  { %s2271_s24 = scalar_lea.hbm %s2905_s0, 1024 }
   0x4   :  { %p2272_p0 = scmp.ne.s32.totalorder %s2905_s0, %s2271_s24  ;;  %p2275_p1 = scmp.lt.u32.totalorder %s2271_s24, %s2905_s0 }
   0x6   :  { %p2277_p2 = pnand %p2275_p1, %p2272_p0 }
   0x8   :  { %2280 = shalt.err (!%p2277_p2)
}
   0x9   :  { %s2281_s29 = scalar_lea.vmem %s19_s19, 1024  ;;  %p2286_p4 = scmp.lt.s32.totalorder %s19_s19, %s19_s19 }
   0xa   :  { %p2282_p3 = scmp.ne.s32.totalorder %s19_s19, %s2281_s29  ;;  %p2287_p5 = scmp.lt.s32.totalorder %s2281_s29, %s2281_s29 }
   0xc   :  { %p2288_p6 = por %p2287_p5, %p2286_p4 }
   0xe   :  { %p2289_p7 = pnand %p2288_p6, %p2282_p3 }
  0x10   :  { %2292 = shalt.err (!%p2289_p7)
}
  0x11   :  { %21 = dma.hbm_to_vmem [thread:$0]  %s2905_s0, 1024, %s19_s19, [#allocation3]  }
  0x12   :  { %s2293_s9 = scalar_lea.hbm %s2906_s1, 65536 }
  0x13   :  { %p2294_p8 = scmp.ne.s32.totalorder %s2906_s1, %s2293_s9  ;;  %p2297_p9 = scmp.lt.u32.totalorder %s2293_s9, %s2906_s1 }
  0x15   :  { %p2299_p10 = pnand %p2297_p9, %p2294_p8 }
  0x17   :  { %2302 = shalt.err (!%p2299_p10)
}
  0x18   :  { %s2303_s14 = scalar_lea.vmem %s2353_s21, 65536  ;;  %p2308_p12 = scmp.lt.s32.totalorder %s2353_s21, %s2353_s21 }
  0x19   :  { %p2304_p11 = scmp.ne.s32.totalorder %s2353_s21, %s2303_s14  ;;  %p2309_p13 = scmp.lt.s32.totalorder %s2303_s14, %s2303_s14 }
  0x1b   :  { %p2310_p0 = por %p2309_p13, %p2308_p12 }
  0x1d   :  { %p2311_p1 = pnand %p2310_p0, %p2304_p11 }
  0x1f   :  { %2314 = shalt.err (!%p2311_p1)
}
  0x20   :  { %s2321_s0 = smov 512   ;;  %s2322_s15 = smov 32  }
  0x21   :  { %33 = dma.hbm_to_vmem [thread:$0]  %s2906_s1, 65536, %s2353_s21, [#allocation5], %s2321_s0, %s2321_s0, %s2322_s15  }
  0x22   :  { %2315 = dma.done.wait [#allocation3], 1024  }
  0x23   :  { %2316 = vsyncadd [#allocation3], 4294966272 }
  0x24   :  { %2317 = dma.done.wait [#allocation5], 65536  }
  0x25   :  { %2318 = vsyncadd [#allocation5], 4294901760  ;;  %v55_v0 = vld [vmem:[#allocation4 + $0x8] sm:$0xff]  ;;  %v54_v5 = vld [vmem:[#allocation4] sm:$0xff] }
  0x26   :  { %v59_v1 = vld [vmem:[#allocation4 + $0x28] sm:$0xff]  ;;  %v58_v6 = vld [vmem:[#allocation4 + $0x20] sm:$0xff] }
  0x27   :  { %v183_v2 = vld [vmem:[#allocation4 + $0x408] sm:$0xff]  ;;  %v1578_v3 = vpack.c.bf16 %v59_v1, %v55_v0  ;;  %v1580_v8 = vpack.c.bf16 %v58_v6, %v54_v5  ;;  %v182_v9 = vld [vmem:[#allocation4 + $0x400] sm:$0xff] }
  0x28   :  { %v187_v4 = vld [vmem:[#allocation4 + $0x428] sm:$0xff]  ;;  %v186_v10 = vld [vmem:[#allocation4 + $0x420] sm:$0xff] }
  0x29   :  { %v1642_v7 = vpack.c.bf16 %v187_v4, %v183_v2  ;;  %v63_v11 = vld [vmem:[#allocation4 + $0x48] sm:$0xff]  ;;  %1579 = vmatprep.subr.bf16.mxu1 %v1578_v3  ;;  %v1644_v12 = vpack.c.bf16 %v186_v10, %v182_v9  ;;  %v62_v18 = vld [vmem:[#allocation4 + $0x40] sm:$0xff] }
  0x2a   :  { %v67_v13 = vld [vmem:[#allocation4 + $0x68] sm:$0xff]  ;;  %1581 = vmatpush1.bf16.msra.mxu1 %v1580_v8  ;;  %v66_v19 = vld [vmem:[#allocation4 + $0x60] sm:$0xff] }
  0x2b   :  { %v191_v14 = vld [vmem:[#allocation4 + $0x448] sm:$0xff]  ;;  %1643 = vmatprep.subr.bf16.mxu0 %v1642_v7  ;;  %v1582_v16 = vpack.c.bf16 %v67_v13, %v63_v11  ;;  %v190_v20 = vld [vmem:[#allocation4 + $0x440] sm:$0xff]  ;;  %v1584_v21 = vpack.c.bf16 %v66_v19, %v62_v18 }
  0x2c   :  { %v195_v15 = vld [vmem:[#allocation4 + $0x468] sm:$0xff]  ;;  %1645 = vmatpush1.bf16.msra.mxu0 %v1644_v12  ;;  %v194_v22 = vld [vmem:[#allocation4 + $0x460] sm:$0xff] }
  0x2d   :  { %v1646_v17 = vpack.c.bf16 %v195_v15, %v191_v14  ;;  %v71_v23 = vld [vmem:[#allocation4 + $0x88] sm:$0xff]  ;;  %1583 = vmatprep.subr.bf16.mxu1 %v1582_v16  ;;  %v1648_v25 = vpack.c.bf16 %v194_v22, %v190_v20  ;;  %v70_v29 = vld [vmem:[#allocation4 + $0x80] sm:$0xff] }
  0x2e   :  { %v75_v24 = vld [vmem:[#allocation4 + $0xa8] sm:$0xff]  ;;  %v74_v31 = vld [vmem:[#allocation4 + $0xa0] sm:$0xff]  ;;  %1585 = vmatpush1.bf16.msra.mxu1 %v1584_v21 }
  0x2f   :  { %1647 = vmatprep.subr.bf16.mxu0 %v1646_v17  ;;  %v1586_v26 = vpack.c.bf16 %v75_v24, %v71_v23  ;;  %v199_v27 = vld [vmem:[#allocation4 + $0x488] sm:$0xff]  ;;  %v198_v32 = vld [vmem:[#allocation4 + $0x480] sm:$0xff]  ;;  %v1588_v34 = vpack.c.bf16 %v74_v31, %v70_v29 }
  0x30   :  { %v203_v28 = vld [vmem:[#allocation4 + $0x4a8] sm:$0xff]  ;;  %v202_v33 = vld [vmem:[#allocation4 + $0x4a0] sm:$0xff]  ;;  %1649 = vmatpush1.bf16.msra.mxu0 %v1648_v25 }
  0x31   :  { %v1650_v30 = vpack.c.bf16 %v203_v28, %v199_v27  ;;  %v79_v35 = vld [vmem:[#allocation4 + $0xc8] sm:$0xff]  ;;  %1587 = vmatprep.subr.bf16.mxu1 %v1586_v26  ;;  %v1652_v38 = vpack.c.bf16 %v202_v33, %v198_v32  ;;  %v78_v41 = vld [vmem:[#allocation4 + $0xc0] sm:$0xff] }
  0x32   :  { %v83_v36 = vld [vmem:[#allocation4 + $0xe8] sm:$0xff]  ;;  %v82_v42 = vld [vmem:[#allocation4 + $0xe0] sm:$0xff]  ;;  %1589 = vmatpush1.bf16.msra.mxu1 %v1588_v34 }
  0x33   :  { %v207_v37 = vld [vmem:[#allocation4 + $0x4c8] sm:$0xff]  ;;  %v1590_v39 = vpack.c.bf16 %v83_v36, %v79_v35  ;;  %1651 = vmatprep.subr.bf16.mxu0 %v1650_v30  ;;  %v206_v44 = vld [vmem:[#allocation4 + $0x4c0] sm:$0xff]  ;;  %v1592_v50 = vpack.c.bf16 %v82_v42, %v78_v41 }
  0x34   :  { %v211_v40 = vld [vmem:[#allocation4 + $0x4e8] sm:$0xff]  ;;  %v210_v45 = vld [vmem:[#allocation4 + $0x4e0] sm:$0xff]  ;;  %1653 = vmatpush1.bf16.msra.mxu0 %v1652_v38 }
  0x35   :  { %v1654_v43 = vpack.c.bf16 %v211_v40, %v207_v37  ;;  %v87_v46 = vld [vmem:[#allocation4 + $0x108] sm:$0xff]  ;;  %1591 = vmatprep.subr.bf16.mxu1 %v1590_v39  ;;  %v1656_v51 = vpack.c.bf16 %v210_v45, %v206_v44  ;;  %v86_v53 = vld [vmem:[#allocation4 + $0x100] sm:$0xff] }
  0x36   :  { %v91_v47 = vld [vmem:[#allocation4 + $0x128] sm:$0xff]  ;;  %v90_v54 = vld [vmem:[#allocation4 + $0x120] sm:$0xff]  ;;  %1593 = vmatpush1.bf16.msra.mxu1 %v1592_v50 }
  0x37   :  { %v215_v48 = vld [vmem:[#allocation4 + $0x508] sm:$0xff]  ;;  %v1594_v52 = vpack.c.bf16 %v91_v47, %v87_v46  ;;  %v214_v55 = vld [vmem:[#allocation4 + $0x500] sm:$0xff]  ;;  %1655 = vmatprep.subr.bf16.mxu0 %v1654_v43  ;;  %v1596_v62 = vpack.c.bf16 %v90_v54, %v86_v53 }
  0x38   :  { %v219_v49 = vld [vmem:[#allocation4 + $0x528] sm:$0xff]  ;;  %v218_v57 = vld [vmem:[#allocation4 + $0x520] sm:$0xff]  ;;  %1657 = vmatpush1.bf16.msra.mxu0 %v1656_v51 }
  0x39   :  { %v1658_v56 = vpack.c.bf16 %v219_v49, %v215_v48  ;;  %v95_v58 = vld [vmem:[#allocation4 + $0x148] sm:$0xff]  ;;  %1595 = vmatprep.subr.bf16.mxu1 %v1594_v52  ;;  %v1660_v63 = vpack.c.bf16 %v218_v57, %v214_v55  ;;  %v94_v1 = vld [vmem:[#allocation4 + $0x140] sm:$0xff] }
  0x3a   :  { %v99_v59 = vld [vmem:[#allocation4 + $0x168] sm:$0xff]  ;;  %v98_v2 = vld [vmem:[#allocation4 + $0x160] sm:$0xff]  ;;  %1597 = vmatpush1.bf16.msra.mxu1 %v1596_v62 }
  0x3b   :  { %v223_v60 = vld [vmem:[#allocation4 + $0x548] sm:$0xff]  ;;  %v1598_v0 = vpack.c.bf16 %v99_v59, %v95_v58  ;;  %v222_v3 = vld [vmem:[#allocation4 + $0x540] sm:$0xff]  ;;  %1659 = vmatprep.subr.bf16.mxu0 %v1658_v56  ;;  %v1600_v10 = vpack.c.bf16 %v98_v2, %v94_v1 }
  0x3c   :  { %v227_v61 = vld [vmem:[#allocation4 + $0x568] sm:$0xff]  ;;  %v226_v5 = vld [vmem:[#allocation4 + $0x560] sm:$0xff]  ;;  %1661 = vmatpush1.bf16.msra.mxu0 %v1660_v63 }
  0x3d   :  { %v1662_v4 = vpack.c.bf16 %v227_v61, %v223_v60  ;;  %v103_v6 = vld [vmem:[#allocation4 + $0x188] sm:$0xff]  ;;  %1599 = vmatprep.subr.bf16.mxu1 %v1598_v0  ;;  %v1664_v11 = vpack.c.bf16 %v226_v5, %v222_v3  ;;  %v102_v13 = vld [vmem:[#allocation4 + $0x180] sm:$0xff] }
  0x3e   :  { %v107_v7 = vld [vmem:[#allocation4 + $0x1a8] sm:$0xff]  ;;  %v106_v14 = vld [vmem:[#allocation4 + $0x1a0] sm:$0xff]  ;;  %1601 = vmatpush1.bf16.msra.mxu1 %v1600_v10 }
  0x3f   :  { %v231_v8 = vld [vmem:[#allocation4 + $0x588] sm:$0xff]  ;;  %v1602_v12 = vpack.c.bf16 %v107_v7, %v103_v6  ;;  %v230_v15 = vld [vmem:[#allocation4 + $0x580] sm:$0xff]  ;;  %1663 = vmatprep.subr.bf16.mxu0 %v1662_v4  ;;  %v1604_v22 = vpack.c.bf16 %v106_v14, %v102_v13 }
  0x40   :  { %v235_v9 = vld [vmem:[#allocation4 + $0x5a8] sm:$0xff]  ;;  %v234_v17 = vld [vmem:[#allocation4 + $0x5a0] sm:$0xff]  ;;  %1665 = vmatpush1.bf16.msra.mxu0 %v1664_v11 }
  0x41   :  { %v1666_v16 = vpack.c.bf16 %v235_v9, %v231_v8  ;;  %v111_v18 = vld [vmem:[#allocation4 + $0x1c8] sm:$0xff]  ;;  %1603 = vmatprep.subr.bf16.mxu1 %v1602_v12  ;;  %v1668_v23 = vpack.c.bf16 %v234_v17, %v230_v15  ;;  %v110_v25 = vld [vmem:[#allocation4 + $0x1c0] sm:$0xff] }
  0x42   :  { %v115_v19 = vld [vmem:[#allocation4 + $0x1e8] sm:$0xff]  ;;  %v114_v26 = vld [vmem:[#allocation4 + $0x1e0] sm:$0xff]  ;;  %1605 = vmatpush1.bf16.msra.mxu1 %v1604_v22 }
  0x43   :  { %v239_v20 = vld [vmem:[#allocation4 + $0x5c8] sm:$0xff]  ;;  %v1606_v24 = vpack.c.bf16 %v115_v19, %v111_v18  ;;  %v238_v27 = vld [vmem:[#allocation4 + $0x5c0] sm:$0xff]  ;;  %1667 = vmatprep.subr.bf16.mxu0 %v1666_v16  ;;  %v1608_v34 = vpack.c.bf16 %v114_v26, %v110_v25  ;;  %v2387_v19 = vld [vmem:[#allocation2 + $0x18] sm:$0xff] }
  0x44   :  { %v243_v21 = vld [vmem:[#allocation4 + $0x5e8] sm:$0xff]  ;;  %v242_v29 = vld [vmem:[#allocation4 + $0x5e0] sm:$0xff]  ;;  %1669 = vmatpush1.bf16.msra.mxu0 %v1668_v23  ;;  %701 = vmatprep.mubr.f32.mxu0 %v2387_v19 }
  0x45   :  { %v1670_v28 = vpack.c.bf16 %v243_v21, %v239_v20  ;;  %v119_v30 = vld [vmem:[#allocation4 + $0x208] sm:$0xff]  ;;  %1607 = vmatprep.subr.bf16.mxu1 %v1606_v24  ;;  %v1672_v35 = vpack.c.bf16 %v242_v29, %v238_v27  ;;  %v118_v37 = vld [vmem:[#allocation4 + $0x200] sm:$0xff] }
  0x46   :  { %v123_v31 = vld [vmem:[#allocation4 + $0x228] sm:$0xff]  ;;  %v122_v38 = vld [vmem:[#allocation4 + $0x220] sm:$0xff]  ;;  %1609 = vmatpush1.bf16.msra.mxu1 %v1608_v34 }
  0x47   :  { %v247_v32 = vld [vmem:[#allocation4 + $0x608] sm:$0xff]  ;;  %v1610_v36 = vpack.c.bf16 %v123_v31, %v119_v30  ;;  %v246_v39 = vld [vmem:[#allocation4 + $0x600] sm:$0xff]  ;;  %1671 = vmatprep.subr.bf16.mxu0 %v1670_v28  ;;  %v1612_v46 = vpack.c.bf16 %v122_v38, %v118_v37 }
  0x48   :  { %v251_v33 = vld [vmem:[#allocation4 + $0x628] sm:$0xff]  ;;  %v250_v41 = vld [vmem:[#allocation4 + $0x620] sm:$0xff]  ;;  %1673 = vmatpush1.bf16.msra.mxu0 %v1672_v35 }
  0x49   :  { %v1674_v40 = vpack.c.bf16 %v251_v33, %v247_v32  ;;  %v127_v42 = vld [vmem:[#allocation4 + $0x248] sm:$0xff]  ;;  %1611 = vmatprep.subr.bf16.mxu1 %v1610_v36  ;;  %v1676_v47 = vpack.c.bf16 %v250_v41, %v246_v39  ;;  %v126_v49 = vld [vmem:[#allocation4 + $0x240] sm:$0xff] }
  0x4a   :  { %v131_v43 = vld [vmem:[#allocation4 + $0x268] sm:$0xff]  ;;  %v130_v50 = vld [vmem:[#allocation4 + $0x260] sm:$0xff]  ;;  %1613 = vmatpush1.bf16.msra.mxu1 %v1612_v46 }
  0x4b   :  { %v255_v44 = vld [vmem:[#allocation4 + $0x648] sm:$0xff]  ;;  %v1614_v48 = vpack.c.bf16 %v131_v43, %v127_v42  ;;  %v254_v51 = vld [vmem:[#allocation4 + $0x640] sm:$0xff]  ;;  %1675 = vmatprep.subr.bf16.mxu0 %v1674_v40  ;;  %v1616_v58 = vpack.c.bf16 %v130_v50, %v126_v49 }
  0x4c   :  { %v259_v45 = vld [vmem:[#allocation4 + $0x668] sm:$0xff]  ;;  %v258_v53 = vld [vmem:[#allocation4 + $0x660] sm:$0xff]  ;;  %1677 = vmatpush1.bf16.msra.mxu0 %v1676_v47 }
  0x4d   :  { %v1678_v52 = vpack.c.bf16 %v259_v45, %v255_v44  ;;  %v135_v54 = vld [vmem:[#allocation4 + $0x288] sm:$0xff]  ;;  %1615 = vmatprep.subr.bf16.mxu1 %v1614_v48  ;;  %v1680_v59 = vpack.c.bf16 %v258_v53, %v254_v51  ;;  %v134_v61 = vld [vmem:[#allocation4 + $0x280] sm:$0xff] }
  0x4e   :  { %v139_v55 = vld [vmem:[#allocation4 + $0x2a8] sm:$0xff]  ;;  %v138_v62 = vld [vmem:[#allocation4 + $0x2a0] sm:$0xff]  ;;  %1617 = vmatpush1.bf16.msra.mxu1 %v1616_v58 }
  0x4f   :  { %v263_v56 = vld [vmem:[#allocation4 + $0x688] sm:$0xff]  ;;  %v1618_v60 = vpack.c.bf16 %v139_v55, %v135_v54  ;;  %v262_v63 = vld [vmem:[#allocation4 + $0x680] sm:$0xff]  ;;  %1679 = vmatprep.subr.bf16.mxu0 %v1678_v52  ;;  %v1620_v6 = vpack.c.bf16 %v138_v62, %v134_v61 }
  0x50   :  { %v267_v57 = vld [vmem:[#allocation4 + $0x6a8] sm:$0xff]  ;;  %v266_v1 = vld [vmem:[#allocation4 + $0x6a0] sm:$0xff]  ;;  %1681 = vmatpush1.bf16.msra.mxu0 %v1680_v59 }
  0x51   :  { %v1682_v0 = vpack.c.bf16 %v267_v57, %v263_v56  ;;  %v143_v2 = vld [vmem:[#allocation4 + $0x2c8] sm:$0xff]  ;;  %v142_v7 = vld [vmem:[#allocation4 + $0x2c0] sm:$0xff]  ;;  %1619 = vmatprep.subr.bf16.mxu1 %v1618_v60  ;;  %v1684_v8 = vpack.c.bf16 %v266_v1, %v262_v63  ;;  %v61_v1 = vld [vmem:[#allocation4 + $0x38] sm:$0xff] }
  0x52   :  { %v147_v3 = vld [vmem:[#allocation4 + $0x2e8] sm:$0xff]  ;;  %v146_v10 = vld [vmem:[#allocation4 + $0x2e0] sm:$0xff]  ;;  %1621 = vmatpush1.bf16.msra.mxu1 %v1620_v6 }
  0x53   :  { %v271_v4 = vld [vmem:[#allocation4 + $0x6c8] sm:$0xff]  ;;  %v1622_v9 = vpack.c.bf16 %v147_v3, %v143_v2  ;;  %v270_v11 = vld [vmem:[#allocation4 + $0x6c0] sm:$0xff]  ;;  %1683 = vmatprep.subr.bf16.mxu0 %v1682_v0  ;;  %v1624_v20 = vpack.c.bf16 %v146_v10, %v142_v7  ;;  %v57_v0 = vld [vmem:[#allocation4 + $0x18] sm:$0xff] }
  0x54   :  { %v275_v5 = vld [vmem:[#allocation4 + $0x6e8] sm:$0xff]  ;;  %v274_v12 = vld [vmem:[#allocation4 + $0x6e0] sm:$0xff]  ;;  %1685 = vmatpush1.bf16.msra.mxu0 %v1684_v8  ;;  %v1834_v6 = vpack.c.bf16 %v61_v1, %v57_v0  ;;  %v56_v8 = vld [vmem:[#allocation4 + $0x10] sm:$0xff] }
  0x55   :  { %v1686_v13 = vpack.c.bf16 %v275_v5, %v271_v4  ;;  %v151_v14 = vld [vmem:[#allocation4 + $0x308] sm:$0xff]  ;;  %1623 = vmatprep.subr.bf16.mxu1 %v1622_v9  ;;  %v1688_v21 = vpack.c.bf16 %v274_v12, %v270_v11  ;;  %v150_v23 = vld [vmem:[#allocation4 + $0x300] sm:$0xff]  ;;  %v60_v9 = vld [vmem:[#allocation4 + $0x30] sm:$0xff] }
  0x56   :  { %v155_v15 = vld [vmem:[#allocation4 + $0x328] sm:$0xff]  ;;  %v154_v24 = vld [vmem:[#allocation4 + $0x320] sm:$0xff]  ;;  %1625 = vmatpush1.bf16.msra.mxu1 %v1624_v20  ;;  %v65_v12 = vld [vmem:[#allocation4 + $0x58] sm:$0xff]  ;;  %v1836_v20 = vpack.c.bf16 %v60_v9, %v56_v8 }
  0x57   :  { %v2384_v16 = vld [vmem:[#allocation2 + $0x8] sm:$0xff]  ;;  %v1626_v22 = vpack.c.bf16 %v155_v15, %v151_v14  ;;  %v278_v25 = vld [vmem:[#allocation4 + $0x700] sm:$0xff]  ;;  %1687 = vmatprep.subr.bf16.mxu0 %v1686_v13  ;;  %v1628_v32 = vpack.c.bf16 %v154_v24, %v150_v23  ;;  %v69_v13 = vld [vmem:[#allocation4 + $0x78] sm:$0xff] }
  0x58   :  { %v279_v17 = vld [vmem:[#allocation4 + $0x708] sm:$0xff]  ;;  %630 = vmatprep.mubr.f32.mxu1 %v2384_v16  ;;  %v282_v27 = vld [vmem:[#allocation4 + $0x720] sm:$0xff]  ;;  %1689 = vmatpush1.bf16.msra.mxu0 %v1688_v21  ;;  %v64_v24 = vld [vmem:[#allocation4 + $0x50] sm:$0xff] }
  0x59   :  { %v283_v18 = vld [vmem:[#allocation4 + $0x728] sm:$0xff]  ;;  %1627 = vmatprep.subr.bf16.mxu1 %v1626_v22  ;;  %v1692_v33 = vpack.c.bf16 %v282_v27, %v278_v25  ;;  %v158_v35 = vld [vmem:[#allocation4 + $0x340] sm:$0xff]  ;;  %v1838_v22 = vpack.c.bf16 %v69_v13, %v65_v12  ;;  %v68_v25 = vld [vmem:[#allocation4 + $0x70] sm:$0xff] }
  0x5a   :  { %v1690_v26 = vpack.c.bf16 %v283_v18, %v279_v17  ;;  %v159_v28 = vld [vmem:[#allocation4 + $0x348] sm:$0xff]  ;;  %v162_v36 = vld [vmem:[#allocation4 + $0x360] sm:$0xff]  ;;  %1629 = vmatpush1.bf16.msra.mxu1 %v1628_v32  ;;  %v48_v18 = vld [vmem:[#allocation2 + $0x10] sm:$0xff]  ;;  %v1840_v32 = vpack.c.bf16 %v68_v25, %v64_v24 }
  0x5b   :  { %v163_v29 = vld [vmem:[#allocation4 + $0x368] sm:$0xff]  ;;  %v286_v37 = vld [vmem:[#allocation4 + $0x740] sm:$0xff]  ;;  %v1632_v44 = vpack.c.bf16 %v162_v36, %v158_v35  ;;  %v72_v36 = vld [vmem:[#allocation4 + $0x90] sm:$0xff] }
  0x5c   :  { %v287_v30 = vld [vmem:[#allocation4 + $0x748] sm:$0xff]  ;;  %v1630_v34 = vpack.c.bf16 %v163_v29, %v159_v28  ;;  %1691 = vmatprep.subr.bf16.mxu0 %v1690_v26  ;;  %v290_v39 = vld [vmem:[#allocation4 + $0x760] sm:$0xff]  ;;  %v73_v28 = vld [vmem:[#allocation4 + $0x98] sm:$0xff] }
  0x5d   :  { %v291_v31 = vld [vmem:[#allocation4 + $0x768] sm:$0xff]  ;;  %1693 = vmatpush1.bf16.msra.mxu0 %v1692_v33  ;;  %v1696_v45 = vpack.c.bf16 %v290_v39, %v286_v37  ;;  %v166_v47 = vld [vmem:[#allocation4 + $0x380] sm:$0xff]  ;;  %v77_v29 = vld [vmem:[#allocation4 + $0xb8] sm:$0xff] }
  0x5e   :  { %v1694_v38 = vpack.c.bf16 %v291_v31, %v287_v30  ;;  %v167_v40 = vld [vmem:[#allocation4 + $0x388] sm:$0xff]  ;;  %1631 = vmatprep.subr.bf16.mxu1 %v1630_v34  ;;  %v170_v48 = vld [vmem:[#allocation4 + $0x3a0] sm:$0xff]  ;;  %v1842_v34 = vpack.c.bf16 %v77_v29, %v73_v28  ;;  %v76_v37 = vld [vmem:[#allocation4 + $0xb0] sm:$0xff] }
  0x5f   :  { %v171_v41 = vld [vmem:[#allocation4 + $0x3a8] sm:$0xff]  ;;  %v294_v49 = vld [vmem:[#allocation4 + $0x780] sm:$0xff]  ;;  %1633 = vmatpush1.bf16.msra.mxu1 %v1632_v44  ;;  %v1636_v56 = vpack.c.bf16 %v170_v48, %v166_v47  ;;  %v1844_v44 = vpack.c.bf16 %v76_v37, %v72_v36  ;;  %v80_v48 = vld [vmem:[#allocation4 + $0xd0] sm:$0xff] }
  0x60   :  { %v295_v42 = vld [vmem:[#allocation4 + $0x788] sm:$0xff]  ;;  %v1634_v46 = vpack.c.bf16 %v171_v41, %v167_v40  ;;  %1695 = vmatprep.subr.bf16.mxu0 %v1694_v38  ;;  %v298_v51 = vld [vmem:[#allocation4 + $0x7a0] sm:$0xff]  ;;  %v81_v40 = vld [vmem:[#allocation4 + $0xd8] sm:$0xff] }
  0x61   :  { %v299_v43 = vld [vmem:[#allocation4 + $0x7a8] sm:$0xff]  ;;  %1697 = vmatpush1.bf16.msra.mxu0 %v1696_v45  ;;  %v1700_v57 = vpack.c.bf16 %v298_v51, %v294_v49  ;;  %v174_v59 = vld [vmem:[#allocation4 + $0x3c0] sm:$0xff]  ;;  %v85_v41 = vld [vmem:[#allocation4 + $0xf8] sm:$0xff] }
  0x62   :  { %v1698_v50 = vpack.c.bf16 %v299_v43, %v295_v42  ;;  %v175_v52 = vld [vmem:[#allocation4 + $0x3c8] sm:$0xff]  ;;  %1635 = vmatprep.subr.bf16.mxu1 %v1634_v46  ;;  %v178_v60 = vld [vmem:[#allocation4 + $0x3e0] sm:$0xff]  ;;  %v1846_v46 = vpack.c.bf16 %v85_v41, %v81_v40  ;;  %v84_v49 = vld [vmem:[#allocation4 + $0xf0] sm:$0xff] }
  0x63   :  { %v179_v53 = vld [vmem:[#allocation4 + $0x3e8] sm:$0xff]  ;;  %v302_v61 = vld [vmem:[#allocation4 + $0x7c0] sm:$0xff]  ;;  %1637 = vmatpush1.bf16.msra.mxu1 %v1636_v56  ;;  %v1640_v4 = vpack.c.bf16 %v178_v60, %v174_v59  ;;  %v88_v59 = vld [vmem:[#allocation4 + $0x110] sm:$0xff] }
  0x64   :  { %v303_v54 = vld [vmem:[#allocation4 + $0x7c8] sm:$0xff]  ;;  %v1638_v58 = vpack.c.bf16 %v179_v53, %v175_v52  ;;  %1699 = vmatprep.subr.bf16.mxu0 %v1698_v50  ;;  %v306_v63 = vld [vmem:[#allocation4 + $0x7e0] sm:$0xff]  ;;  %v89_v52 = vld [vmem:[#allocation4 + $0x118] sm:$0xff] }
  0x65   :  { %v307_v55 = vld [vmem:[#allocation4 + $0x7e8] sm:$0xff]  ;;  %1701 = vmatpush1.bf16.msra.mxu0 %v1700_v57  ;;  %v1704_v5 = vpack.c.bf16 %v306_v63, %v302_v61  ;;  %v310_v7 = vld [vmem:[#allocation4 + $0x800] sm:$0xff]  ;;  %v93_v53 = vld [vmem:[#allocation4 + $0x138] sm:$0xff] }
  0x66   :  { %v1702_v62 = vpack.c.bf16 %v307_v55, %v303_v54  ;;  %v311_v2 = vld [vmem:[#allocation4 + $0x808] sm:$0xff]  ;;  %1639 = vmatprep.subr.bf16.mxu1 %v1638_v58  ;;  %v314_v11 = vld [vmem:[#allocation4 + $0x820] sm:$0xff]  ;;  %v1850_v57 = vpack.c.bf16 %v93_v53, %v89_v52  ;;  %v92_v60 = vld [vmem:[#allocation4 + $0x130] sm:$0xff] }
  0x67   :  { %v315_v3 = vld [vmem:[#allocation4 + $0x828] sm:$0xff]  ;;  %1641 = vmatpush1.bf16.msra.mxu1 %v1640_v4  ;;  %v2390_v17 = vld [vmem:[#allocation2] sm:$0xff]  ;;  %v1708_v21 = vpack.c.bf16 %v314_v11, %v310_v7  ;;  %v97_v63 = vld [vmem:[#allocation4 + $0x158] sm:$0xff] }
  0x68   :  { %1703 = vmatprep.subr.bf16.mxu0 %v1702_v62  ;;  %v1706_v10 = vpack.c.bf16 %v315_v3, %v311_v2  ;;  %v319_v14 = vld [vmem:[#allocation4 + $0x848] sm:$0xff]  ;;  %1835 = vmatprep.subr.bf16.mxu1 %v1834_v6  ;;  %v318_v23 = vld [vmem:[#allocation4 + $0x840] sm:$0xff]  ;;  %v101_v0 = vld [vmem:[#allocation4 + $0x178] sm:$0xff]  ;;  %v1852_v3 = vpack.c.bf16 %v92_v60, %v88_v59 }
  0x69   :  { %v323_v15 = vld [vmem:[#allocation4 + $0x868] sm:$0xff]  ;;  %1705 = vmatpush1.bf16.msra.mxu0 %v1704_v5  ;;  %v322_v27 = vld [vmem:[#allocation4 + $0x860] sm:$0xff]  ;;  %v1854_v5 = vpack.c.bf16 %v101_v0, %v97_v63  ;;  %v96_v7 = vld [vmem:[#allocation4 + $0x150] sm:$0xff] }
  0x6a   :  { %1707 = vmatprep.subr.bf16.mxu0 %v1706_v10  ;;  %v1710_v26 = vpack.c.bf16 %v323_v15, %v319_v14  ;;  %631 = vmatmul.mubr.f32.vlgmr.msra.gmra.mrb[0].mxu1 %v2390_v17  ;;  %v327_v30 = vld [vmem:[#allocation4 + $0x888] sm:$0xff]  ;;  %v1712_v33 = vpack.c.bf16 %v322_v27, %v318_v23  ;;  %v326_v35 = vld [vmem:[#allocation4 + $0x880] sm:$0xff]  ;;  %v100_v8 = vld [vmem:[#allocation4 + $0x170] sm:$0xff] }
  0x6b   :  { %v331_v31 = vld [vmem:[#allocation4 + $0x8a8] sm:$0xff]  ;;  %1837 = vmatpush1.bf16.msra.mxu1 %v1836_v20  ;;  %v330_v39 = vld [vmem:[#allocation4 + $0x8a0] sm:$0xff]  ;;  %914 = vmatprep.mubr.f32.mxu1 %v2384_v16  ;;  %v1848_v16 = vpack.c.bf16 %v84_v49, %v80_v48  ;;  %v105_v11 = vld [vmem:[#allocation4 + $0x198] sm:$0xff]  ;;  %v1856_v15 = vpack.c.bf16 %v100_v8, %v96_v7 }
  0x6c   :  { %702 = vmatmul.mubr.f32.vlgmr.msra.gmra.mrb[0].mxu0 %v48_v18  ;;  %1839 = vmatprep.subr.bf16.mxu1 %v1838_v22  ;;  %v1714_v38 = vpack.c.bf16 %v331_v31, %v327_v30  ;;  %v335_v42 = vld [vmem:[#allocation4 + $0x8c8] sm:$0xff]  ;;  %v1716_v45 = vpack.c.bf16 %v330_v39, %v326_v35  ;;  %v334_v47 = vld [vmem:[#allocation4 + $0x8c0] sm:$0xff]  ;;  %v109_v12 = vld [vmem:[#allocation4 + $0x1b8] sm:$0xff] }
  0x6d   :  { %1709 = vmatpush1.bf16.msra.mxu0 %v1708_v21  ;;  %v339_v43 = vld [vmem:[#allocation4 + $0x8e8] sm:$0xff]  ;;  %v338_v51 = vld [vmem:[#allocation4 + $0x8e0] sm:$0xff]  ;;  %v1858_v21 = vpack.c.bf16 %v109_v12, %v105_v11  ;;  %v104_v23 = vld [vmem:[#allocation4 + $0x190] sm:$0xff] }
  0x6e   :  { %1711 = vmatprep.subr.bf16.mxu0 %v1710_v26  ;;  %v1718_v50 = vpack.c.bf16 %v339_v43, %v335_v42  ;;  %v343_v54 = vld [vmem:[#allocation4 + $0x908] sm:$0xff]  ;;  %v1720_v56 = vpack.c.bf16 %v338_v51, %v334_v47  ;;  %v342_v58 = vld [vmem:[#allocation4 + $0x900] sm:$0xff]  ;;  %v108_v24 = vld [vmem:[#allocation4 + $0x1b0] sm:$0xff] }
  0x6f   :  { %1841 = vmatpush1.bf16.msra.mxu1 %v1840_v32  ;;  %v347_v55 = vld [vmem:[#allocation4 + $0x928] sm:$0xff]  ;;  %v346_v62 = vld [vmem:[#allocation4 + $0x920] sm:$0xff]  ;;  %v113_v26 = vld [vmem:[#allocation4 + $0x1d8] sm:$0xff]  ;;  %v1860_v31 = vpack.c.bf16 %v108_v24, %v104_v23 }
  0x70   :  { %1843 = vmatprep.subr.bf16.mxu1 %v1842_v34  ;;  %v1722_v61 = vpack.c.bf16 %v347_v55, %v343_v54  ;;  %v351_v1 = vld [vmem:[#allocation4 + $0x948] sm:$0xff]  ;;  %v1724_v4 = vpack.c.bf16 %v346_v62, %v342_v58  ;;  %v350_v6 = vld [vmem:[#allocation4 + $0x940] sm:$0xff]  ;;  %v117_v27 = vld [vmem:[#allocation4 + $0x1f8] sm:$0xff] }
  0x71   :  { %1713 = vmatpush1.bf16.msra.mxu0 %v1712_v33  ;;  %v355_v2 = vld [vmem:[#allocation4 + $0x968] sm:$0xff]  ;;  %v354_v10 = vld [vmem:[#allocation4 + $0x960] sm:$0xff]  ;;  %v1862_v33 = vpack.c.bf16 %v117_v27, %v113_v26  ;;  %v112_v35 = vld [vmem:[#allocation4 + $0x1d0] sm:$0xff] }
  0x72   :  { %1715 = vmatprep.subr.bf16.mxu0 %v1714_v38  ;;  %v1726_v9 = vpack.c.bf16 %v355_v2, %v351_v1  ;;  %v359_v13 = vld [vmem:[#allocation4 + $0x988] sm:$0xff]  ;;  %v358_v18 = vld [vmem:[#allocation4 + $0x980] sm:$0xff]  ;;  %v1728_v20 = vpack.c.bf16 %v354_v10, %v350_v6  ;;  %v116_v36 = vld [vmem:[#allocation4 + $0x1f0] sm:$0xff] }
  0x73   :  { %1845 = vmatpush1.bf16.msra.mxu1 %v1844_v44  ;;  %v363_v14 = vld [vmem:[#allocation4 + $0x9a8] sm:$0xff]  ;;  %v362_v22 = vld [vmem:[#allocation4 + $0x9a0] sm:$0xff]  ;;  %v121_v39 = vld [vmem:[#allocation4 + $0x218] sm:$0xff]  ;;  %v1864_v43 = vpack.c.bf16 %v116_v36, %v112_v35 }
  0x74   :  { %1847 = vmatprep.subr.bf16.mxu1 %v1846_v46  ;;  %v1730_v25 = vpack.c.bf16 %v363_v14, %v359_v13  ;;  %v2394_v28 = vld [vmem:[#allocation2 + $0x28] sm:$0xff]  ;;  %v1732_v32 = vpack.c.bf16 %v362_v22, %v358_v18  ;;  %v366_v34 = vld [vmem:[#allocation4 + $0x9c0] sm:$0xff]  ;;  %v125_v40 = vld [vmem:[#allocation4 + $0x238] sm:$0xff] }
  0x75   :  { %1717 = vmatpush1.bf16.msra.mxu0 %v1716_v45  ;;  %v367_v29 = vld [vmem:[#allocation4 + $0x9c8] sm:$0xff]  ;;  %772 = vmatprep.mubr.f32.mxu0 %v2394_v28  ;;  %v370_v38 = vld [vmem:[#allocation4 + $0x9e0] sm:$0xff]  ;;  %v1866_v45 = vpack.c.bf16 %v125_v40, %v121_v39  ;;  %v120_v47 = vld [vmem:[#allocation4 + $0x210] sm:$0xff] }
  0x76   :  { %1719 = vmatprep.subr.bf16.mxu0 %v1718_v50  ;;  %v371_v30 = vld [vmem:[#allocation4 + $0x9e8] sm:$0xff]  ;;  %v1736_v44 = vpack.c.bf16 %v370_v38, %v366_v34  ;;  %v374_v46 = vld [vmem:[#allocation4 + $0xa00] sm:$0xff]  ;;  %v124_v48 = vld [vmem:[#allocation4 + $0x230] sm:$0xff] }
  0x77   :  { %1849 = vmatpush1.bf16.msra.mxu1 %v1848_v16  ;;  %v1734_v37 = vpack.c.bf16 %v371_v30, %v367_v29  ;;  %v375_v41 = vld [vmem:[#allocation4 + $0xa08] sm:$0xff]  ;;  %v378_v50 = vld [vmem:[#allocation4 + $0xa20] sm:$0xff]  ;;  %v129_v51 = vld [vmem:[#allocation4 + $0x258] sm:$0xff]  ;;  %v1868_v55 = vpack.c.bf16 %v124_v48, %v120_v47 }
  0x78   :  { %1851 = vmatprep.subr.bf16.mxu1 %v1850_v57  ;;  %v379_v42 = vld [vmem:[#allocation4 + $0xa28] sm:$0xff]  ;;  %v133_v52 = vld [vmem:[#allocation4 + $0x278] sm:$0xff]  ;;  %v1740_v16 = vpack.c.bf16 %v378_v50, %v374_v46  ;;  %v382_v57 = vld [vmem:[#allocation4 + $0xa40] sm:$0xff] }
  0x79   :  { %1721 = vmatpush1.bf16.msra.mxu0 %v1720_v56  ;;  %v1738_v49 = vpack.c.bf16 %v379_v42, %v375_v41  ;;  %v383_v53 = vld [vmem:[#allocation4 + $0xa48] sm:$0xff]  ;;  %v1870_v56 = vpack.c.bf16 %v133_v52, %v129_v51  ;;  %v128_v58 = vld [vmem:[#allocation4 + $0x250] sm:$0xff]  ;;  %v137_v62 = vld [vmem:[#allocation4 + $0x298] sm:$0xff] }
  0x7a   :  { %1723 = vmatprep.subr.bf16.mxu0 %v1722_v61  ;;  %v387_v54 = vld [vmem:[#allocation4 + $0xa68] sm:$0xff]  ;;  %v132_v59 = vld [vmem:[#allocation4 + $0x270] sm:$0xff]  ;;  %v386_v61 = vld [vmem:[#allocation4 + $0xa60] sm:$0xff] }
  0x7b   :  { %1853 = vmatpush1.bf16.msra.mxu1 %v1852_v3  ;;  %v1742_v60 = vpack.c.bf16 %v387_v54, %v383_v53  ;;  %v141_v63 = vld [vmem:[#allocation4 + $0x2b8] sm:$0xff]  ;;  %v391_v0 = vld [vmem:[#allocation4 + $0xa88] sm:$0xff]  ;;  %v1872_v2 = vpack.c.bf16 %v132_v59, %v128_v58  ;;  %v1744_v3 = vpack.c.bf16 %v386_v61, %v382_v57  ;;  %v136_v6 = vld [vmem:[#allocation4 + $0x290] sm:$0xff] }
  0x7c   :  { %1855 = vmatprep.subr.bf16.mxu1 %v1854_v5  ;;  %v395_v1 = vld [vmem:[#allocation4 + $0xaa8] sm:$0xff]  ;;  %v390_v5 = vld [vmem:[#allocation4 + $0xa80] sm:$0xff]  ;;  %v140_v7 = vld [vmem:[#allocation4 + $0x2b0] sm:$0xff] }
  0x7d   :  { %1725 = vmatpush1.bf16.msra.mxu0 %v1724_v4  ;;  %v1874_v4 = vpack.c.bf16 %v141_v63, %v137_v62  ;;  %v1746_v8 = vpack.c.bf16 %v395_v1, %v391_v0  ;;  %v145_v10 = vld [vmem:[#allocation4 + $0x2d8] sm:$0xff]  ;;  %v399_v12 = vld [vmem:[#allocation4 + $0xac8] sm:$0xff]  ;;  %v1876_v14 = vpack.c.bf16 %v140_v7, %v136_v6  ;;  %v148_v22 = vld [vmem:[#allocation4 + $0x2f0] sm:$0xff] }
  0x7e   :  { %1727 = vmatprep.subr.bf16.mxu0 %v1726_v9  ;;  %v394_v9 = vld [vmem:[#allocation4 + $0xaa0] sm:$0xff]  ;;  %v149_v11 = vld [vmem:[#allocation4 + $0x2f8] sm:$0xff]  ;;  %v403_v13 = vld [vmem:[#allocation4 + $0xae8] sm:$0xff] }
  0x7f   :  { %1857 = vmatpush1.bf16.msra.mxu1 %v1856_v15  ;;  %v1748_v15 = vpack.c.bf16 %v394_v9, %v390_v5  ;;  %v1878_v18 = vpack.c.bf16 %v149_v11, %v145_v10  ;;  %v1750_v23 = vpack.c.bf16 %v403_v13, %v399_v12  ;;  %v402_v24 = vld [vmem:[#allocation4 + $0xae0] sm:$0xff]  ;;  %v157_v26 = vld [vmem:[#allocation4 + $0x338] sm:$0xff]  ;;  %v407_v27 = vld [vmem:[#allocation4 + $0xb08] sm:$0xff] }
  0x80   :  { %1859 = vmatprep.subr.bf16.mxu1 %v1858_v21  ;;  %v144_v21 = vld [vmem:[#allocation4 + $0x2d0] sm:$0xff]  ;;  %v411_v29 = vld [vmem:[#allocation4 + $0xb28] sm:$0xff]  ;;  %v161_v38 = vld [vmem:[#allocation4 + $0x358] sm:$0xff] }
  0x81   :  { %1729 = vmatpush1.bf16.msra.mxu0 %v1728_v20  ;;  %v398_v20 = vld [vmem:[#allocation4 + $0xac0] sm:$0xff]  ;;  %v1880_v30 = vpack.c.bf16 %v148_v22, %v144_v21  ;;  %v152_v34 = vld [vmem:[#allocation4 + $0x310] sm:$0xff]  ;;  %v1754_v36 = vpack.c.bf16 %v411_v29, %v407_v27  ;;  %v165_v39 = vld [vmem:[#allocation4 + $0x378] sm:$0xff] }
  0x82   :  { %1731 = vmatprep.subr.bf16.mxu0 %v1730_v25  ;;  %v153_v25 = vld [vmem:[#allocation4 + $0x318] sm:$0xff]  ;;  %v156_v35 = vld [vmem:[#allocation4 + $0x330] sm:$0xff]  ;;  %v415_v40 = vld [vmem:[#allocation4 + $0xb48] sm:$0xff] }
  0x83   :  { %1861 = vmatpush1.bf16.msra.mxu1 %v1860_v31  ;;  %v1752_v31 = vpack.c.bf16 %v402_v24, %v398_v20  ;;  %v419_v41 = vld [vmem:[#allocation4 + $0xb68] sm:$0xff]  ;;  %v1884_v42 = vpack.c.bf16 %v156_v35, %v152_v34  ;;  %v160_v46 = vld [vmem:[#allocation4 + $0x350] sm:$0xff]  ;;  %v169_v50 = vld [vmem:[#allocation4 + $0x398] sm:$0xff] }
  0x84   :  { %1863 = vmatprep.subr.bf16.mxu1 %v1862_v33  ;;  %v406_v33 = vld [vmem:[#allocation4 + $0xb00] sm:$0xff]  ;;  %v164_v47 = vld [vmem:[#allocation4 + $0x370] sm:$0xff]  ;;  %v1758_v48 = vpack.c.bf16 %v419_v41, %v415_v40  ;;  %v173_v51 = vld [vmem:[#allocation4 + $0x3b8] sm:$0xff] }
  0x85   :  { %1733 = vmatpush1.bf16.msra.mxu0 %v1732_v32  ;;  %v1882_v32 = vpack.c.bf16 %v157_v26, %v153_v25  ;;  %v423_v52 = vld [vmem:[#allocation4 + $0xb88] sm:$0xff]  ;;  %v1888_v54 = vpack.c.bf16 %v164_v47, %v160_v46  ;;  %v168_v57 = vld [vmem:[#allocation4 + $0x390] sm:$0xff]  ;;  %v177_v61 = vld [vmem:[#allocation4 + $0x3d8] sm:$0xff] }
  0x86   :  { %1735 = vmatprep.subr.bf16.mxu0 %v1734_v37  ;;  %v410_v37 = vld [vmem:[#allocation4 + $0xb20] sm:$0xff]  ;;  %v427_v53 = vld [vmem:[#allocation4 + $0xba8] sm:$0xff]  ;;  %v172_v58 = vld [vmem:[#allocation4 + $0x3b0] sm:$0xff] }
  0x87   :  { %1865 = vmatpush1.bf16.msra.mxu1 %v1864_v43  ;;  %v1756_v43 = vpack.c.bf16 %v410_v37, %v406_v33  ;;  %v1762_v59 = vpack.c.bf16 %v427_v53, %v423_v52  ;;  %v181_v62 = vld [vmem:[#allocation4 + $0x3f8] sm:$0xff]  ;;  %v431_v63 = vld [vmem:[#allocation4 + $0xbc8] sm:$0xff]  ;;  %v1892_v1 = vpack.c.bf16 %v172_v58, %v168_v57  ;;  %v176_v5 = vld [vmem:[#allocation4 + $0x3d0] sm:$0xff] }
  0x88   :  { %1867 = vmatprep.subr.bf16.mxu1 %v1866_v45  ;;  %v414_v45 = vld [vmem:[#allocation4 + $0xb40] sm:$0xff]  ;;  %v435_v0 = vld [vmem:[#allocation4 + $0xbe8] sm:$0xff]  ;;  %v180_v6 = vld [vmem:[#allocation4 + $0x3f0] sm:$0xff] }
  0x89   :  { %1737 = vmatpush1.bf16.msra.mxu0 %v1736_v44  ;;  %v1886_v44 = vpack.c.bf16 %v165_v39, %v161_v38  ;;  %v1766_v7 = vpack.c.bf16 %v435_v0, %v431_v63  ;;  %v185_v9 = vld [vmem:[#allocation4 + $0x418] sm:$0xff]  ;;  %v439_v11 = vld [vmem:[#allocation4 + $0xc08] sm:$0xff]  ;;  %v1896_v13 = vpack.c.bf16 %v180_v6, %v176_v5  ;;  %v184_v20 = vld [vmem:[#allocation4 + $0x410] sm:$0xff] }
  0x8a   :  { %1739 = vmatprep.subr.bf16.mxu0 %v1738_v49  ;;  %v418_v49 = vld [vmem:[#allocation4 + $0xb60] sm:$0xff]  ;;  %v189_v10 = vld [vmem:[#allocation4 + $0x438] sm:$0xff]  ;;  %v443_v12 = vld [vmem:[#allocation4 + $0xc28] sm:$0xff] }
  0x8b   :  { %1869 = vmatpush1.bf16.msra.mxu1 %v1868_v55  ;;  %v1760_v55 = vpack.c.bf16 %v418_v49, %v414_v45  ;;  %v188_v21 = vld [vmem:[#allocation4 + $0x430] sm:$0xff]  ;;  %v1770_v22 = vpack.c.bf16 %v443_v12, %v439_v11  ;;  %v193_v24 = vld [vmem:[#allocation4 + $0x458] sm:$0xff]  ;;  %v447_v26 = vld [vmem:[#allocation4 + $0xc48] sm:$0xff] }
  0x8c   :  { %1871 = vmatprep.subr.bf16.mxu1 %v1870_v56  ;;  %v422_v56 = vld [vmem:[#allocation4 + $0xb80] sm:$0xff]  ;;  %v197_v25 = vld [vmem:[#allocation4 + $0x478] sm:$0xff]  ;;  %v451_v27 = vld [vmem:[#allocation4 + $0xc68] sm:$0xff] }
  0x8d   :  { %1741 = vmatpush1.bf16.msra.mxu0 %v1740_v16  ;;  %v1890_v16 = vpack.c.bf16 %v173_v51, %v169_v50  ;;  %v2397_v29 = vld [vmem:[#allocation2 + $0x20] sm:$0xff]  ;;  %v192_v34 = vld [vmem:[#allocation4 + $0x450] sm:$0xff]  ;;  %v201_v38 = vld [vmem:[#allocation4 + $0x498] sm:$0xff] }
  0x8e   :  { %1743 = vmatprep.subr.bf16.mxu0 %v1742_v60  ;;  %v426_v60 = vld [vmem:[#allocation4 + $0xba0] sm:$0xff]  ;;  %v196_v35 = vld [vmem:[#allocation4 + $0x470] sm:$0xff]  ;;  %v205_v39 = vld [vmem:[#allocation4 + $0x4b8] sm:$0xff] }
  0x8f   :  { %1873 = vmatpush1.bf16.msra.mxu1 %v1872_v2  ;;  %v1764_v2 = vpack.c.bf16 %v426_v60, %v422_v56  ;;  %v446_v33 = vld [vmem:[#allocation4 + $0xc40] sm:$0xff]  ;;  %v455_v40 = vld [vmem:[#allocation4 + $0xc88] sm:$0xff]  ;;  %v1906_v45 = vpack.c.bf16 %v205_v39, %v201_v38  ;;  %v200_v47 = vld [vmem:[#allocation4 + $0x490] sm:$0xff] }
  0x90   :  { %1875 = vmatprep.subr.bf16.mxu1 %v1874_v4  ;;  %v430_v4 = vld [vmem:[#allocation4 + $0xbc0] sm:$0xff]  ;;  %v459_v41 = vld [vmem:[#allocation4 + $0xca8] sm:$0xff]  ;;  %v209_v51 = vld [vmem:[#allocation4 + $0x4d8] sm:$0xff] }
  0x91   :  { %1745 = vmatpush1.bf16.msra.mxu0 %v1744_v3  ;;  %v1894_v3 = vpack.c.bf16 %v181_v62, %v177_v61  ;;  %v450_v37 = vld [vmem:[#allocation4 + $0xc60] sm:$0xff]  ;;  %v1778_v49 = vpack.c.bf16 %v459_v41, %v455_v40  ;;  %v463_v52 = vld [vmem:[#allocation4 + $0xcc8] sm:$0xff]  ;;  %v208_v57 = vld [vmem:[#allocation4 + $0x4d0] sm:$0xff] }
  0x92   :  { %1747 = vmatprep.subr.bf16.mxu0 %v1746_v8  ;;  %v434_v8 = vld [vmem:[#allocation4 + $0xbe0] sm:$0xff]  ;;  %v467_v53 = vld [vmem:[#allocation4 + $0xce8] sm:$0xff]  ;;  %v212_v58 = vld [vmem:[#allocation4 + $0x4f0] sm:$0xff] }
  0x93   :  { %1877 = vmatpush1.bf16.msra.mxu1 %v1876_v14  ;;  %v1768_v14 = vpack.c.bf16 %v434_v8, %v430_v4  ;;  %v454_v46 = vld [vmem:[#allocation4 + $0xc80] sm:$0xff]  ;;  %v217_v61 = vld [vmem:[#allocation4 + $0x518] sm:$0xff]  ;;  %v471_v63 = vld [vmem:[#allocation4 + $0xd08] sm:$0xff] }
  0x94   :  { %1879 = vmatprep.subr.bf16.mxu1 %v1878_v18  ;;  %v438_v18 = vld [vmem:[#allocation4 + $0xc00] sm:$0xff]  ;;  %v221_v62 = vld [vmem:[#allocation4 + $0x538] sm:$0xff]  ;;  %v475_v0 = vld [vmem:[#allocation4 + $0xd28] sm:$0xff] }
  0x95   :  { %1749 = vmatpush1.bf16.msra.mxu0 %v1748_v15  ;;  %v1898_v15 = vpack.c.bf16 %v189_v10, %v185_v9  ;;  %v458_v50 = vld [vmem:[#allocation4 + $0xca0] sm:$0xff]  ;;  %v216_v4 = vld [vmem:[#allocation4 + $0x510] sm:$0xff]  ;;  %v1786_v6 = vpack.c.bf16 %v475_v0, %v471_v63  ;;  %v225_v8 = vld [vmem:[#allocation4 + $0x558] sm:$0xff] }
  0x96   :  { %1751 = vmatprep.subr.bf16.mxu0 %v1750_v23  ;;  %v442_v23 = vld [vmem:[#allocation4 + $0xc20] sm:$0xff]  ;;  %v220_v5 = vld [vmem:[#allocation4 + $0x530] sm:$0xff]  ;;  %v229_v9 = vld [vmem:[#allocation4 + $0x578] sm:$0xff] }
  0x97   :  { %1881 = vmatpush1.bf16.msra.mxu1 %v1880_v30  ;;  %v1900_v30 = vpack.c.bf16 %v188_v21, %v184_v20  ;;  %v462_v56 = vld [vmem:[#allocation4 + $0xcc0] sm:$0xff]  ;;  %v479_v10 = vld [vmem:[#allocation4 + $0xd48] sm:$0xff]  ;;  %v1916_v12 = vpack.c.bf16 %v220_v5, %v216_v4  ;;  %v228_v20 = vld [vmem:[#allocation4 + $0x570] sm:$0xff] }
  0x98   :  { %1883 = vmatprep.subr.bf16.mxu1 %v1882_v32  ;;  %v1902_v32 = vpack.c.bf16 %v197_v25, %v193_v24  ;;  %v466_v60 = vld [vmem:[#allocation4 + $0xce0] sm:$0xff]  ;;  %v483_v11 = vld [vmem:[#allocation4 + $0xd68] sm:$0xff]  ;;  %v237_v24 = vld [vmem:[#allocation4 + $0x5b8] sm:$0xff] }
  0x99   :  { %1753 = vmatpush1.bf16.msra.mxu0 %v1752_v31  ;;  %v1772_v31 = vpack.c.bf16 %v442_v23, %v438_v18  ;;  %v224_v18 = vld [vmem:[#allocation4 + $0x550] sm:$0xff]  ;;  %v1790_v21 = vpack.c.bf16 %v483_v11, %v479_v10  ;;  %v233_v23 = vld [vmem:[#allocation4 + $0x598] sm:$0xff]  ;;  %v487_v25 = vld [vmem:[#allocation4 + $0xd88] sm:$0xff] }
  0x9a   :  { %1755 = vmatprep.subr.bf16.mxu0 %v1754_v36  ;;  %v1774_v36 = vpack.c.bf16 %v451_v27, %v447_v26  ;;  %v491_v26 = vld [vmem:[#allocation4 + $0xda8] sm:$0xff]  ;;  %v1920_v27 = vpack.c.bf16 %v228_v20, %v224_v18  ;;  %v245_v38 = vld [vmem:[#allocation4 + $0x5f8] sm:$0xff]  ;;  %v260_v4 = vld [vmem:[#allocation4 + $0x670] sm:$0xff] }
  0x9b   :  { %1885 = vmatpush1.bf16.msra.mxu1 %v1884_v42  ;;  %v2400_v42 = vld [vmem:[#allocation2 + $0x38] sm:$0xff]  ;;  %v495_v39 = vld [vmem:[#allocation4 + $0xdc8] sm:$0xff]  ;;  %v268_v18 = vld [vmem:[#allocation4 + $0x6b0] sm:$0xff] }
  0x9c   :  { %1887 = vmatprep.subr.bf16.mxu1 %v1886_v44  ;;  %v1776_v44 = vpack.c.bf16 %v450_v37, %v446_v33  ;;  %v232_v33 = vld [vmem:[#allocation4 + $0x590] sm:$0xff]  ;;  %v241_v37 = vld [vmem:[#allocation4 + $0x5d8] sm:$0xff]  ;;  %v499_v40 = vld [vmem:[#allocation4 + $0xde8] sm:$0xff] }
  0x9d   :  { %1757 = vmatpush1.bf16.msra.mxu0 %v1756_v43  ;;  %v1904_v43 = vpack.c.bf16 %v196_v35, %v192_v34  ;;  %v236_v34 = vld [vmem:[#allocation4 + $0x5b0] sm:$0xff]  ;;  %v1794_v35 = vpack.c.bf16 %v491_v26, %v487_v25  ;;  %v515_v63 = vld [vmem:[#allocation4 + $0xe68] sm:$0xff] }
  0x9e   :  { %1759 = vmatprep.subr.bf16.mxu0 %v1758_v48  ;;  %v204_v48 = vld [vmem:[#allocation4 + $0x4b0] sm:$0xff]  ;;  %v1924_v41 = vpack.c.bf16 %v236_v34, %v232_v33  ;;  %v523_v10 = vld [vmem:[#allocation4 + $0xea8] sm:$0xff] }
  0x9f   :  { %1889 = vmatpush1.bf16.msra.mxu1 %v1888_v54  ;;  %v1908_v54 = vpack.c.bf16 %v204_v48, %v200_v47  ;;  %v244_v47 = vld [vmem:[#allocation4 + $0x5f0] sm:$0xff]  ;;  %v1798_v48 = vpack.c.bf16 %v499_v40, %v495_v39  ;;  %v531_v25 = vld [vmem:[#allocation4 + $0xee8] sm:$0xff] }
  0xa0   :  { %1891 = vmatprep.subr.bf16.mxu1 %v1890_v16  ;;  %v276_v33 = vld [vmem:[#allocation4 + $0x6f0] sm:$0xff]  ;;  %v539_v39 = vld [vmem:[#allocation4 + $0xf28] sm:$0xff] }
  0xa1   :  { %1761 = vmatpush1.bf16.msra.mxu0 %v1760_v55  ;;  %v1780_v55 = vpack.c.bf16 %v458_v50, %v454_v46  ;;  %v240_v46 = vld [vmem:[#allocation4 + $0x5d0] sm:$0xff]  ;;  %v249_v50 = vld [vmem:[#allocation4 + $0x618] sm:$0xff] }
  0xa2   :  { %1763 = vmatprep.subr.bf16.mxu0 %v1762_v59  ;;  %v1782_v59 = vpack.c.bf16 %v467_v53, %v463_v52  ;;  %v507_v52 = vld [vmem:[#allocation4 + $0xe28] sm:$0xff]  ;;  %v1928_v53 = vpack.c.bf16 %v244_v47, %v240_v46  ;;  %v284_v46 = vld [vmem:[#allocation4 + $0x730] sm:$0xff] }
  0xa3   :  { %1893 = vmatpush1.bf16.msra.mxu1 %v1892_v1  ;;  %v1912_v1 = vpack.c.bf16 %v212_v58, %v208_v57  ;;  %v252_v57 = vld [vmem:[#allocation4 + $0x630] sm:$0xff] }
  0xa4   :  { %1895 = vmatprep.subr.bf16.mxu1 %v1894_v3  ;;  %v470_v3 = vld [vmem:[#allocation4 + $0xd00] sm:$0xff] }
  0xa5   :  { %1765 = vmatpush1.bf16.msra.mxu0 %v1764_v2  ;;  %v1914_v2 = vpack.c.bf16 %v221_v62, %v217_v61  ;;  %v261_v61 = vld [vmem:[#allocation4 + $0x678] sm:$0xff]  ;;  %v511_v62 = vld [vmem:[#allocation4 + $0xe48] sm:$0xff] }
  0xa6   :  { %1767 = vmatprep.subr.bf16.mxu0 %v1766_v7  ;;  %v474_v7 = vld [vmem:[#allocation4 + $0xd20] sm:$0xff]  ;;  %v1806_v5 = vpack.c.bf16 %v515_v63, %v511_v62  ;;  %v555_v62 = vld [vmem:[#allocation4 + $0xfa8] sm:$0xff] }
  0xa7   :  { %1897 = vmatpush1.bf16.msra.mxu1 %v1896_v13  ;;  %v1788_v13 = vpack.c.bf16 %v474_v7, %v470_v3  ;;  %v256_v3 = vld [vmem:[#allocation4 + $0x650] sm:$0xff]  ;;  %v265_v7 = vld [vmem:[#allocation4 + $0x698] sm:$0xff] }
  0xa8   :  { %1899 = vmatprep.subr.bf16.mxu1 %v1898_v15  ;;  %v478_v15 = vld [vmem:[#allocation4 + $0xd40] sm:$0xff]  ;;  %v1936_v11 = vpack.c.bf16 %v260_v4, %v256_v3  ;;  %v300_v3 = vld [vmem:[#allocation4 + $0x7b0] sm:$0xff] }
  0xa9   :  { %1769 = vmatpush1.bf16.msra.mxu0 %v1768_v14  ;;  %v1918_v14 = vpack.c.bf16 %v229_v9, %v225_v8  ;;  %v269_v8 = vld [vmem:[#allocation4 + $0x6b8] sm:$0xff]  ;;  %v519_v9 = vld [vmem:[#allocation4 + $0xe88] sm:$0xff] }
  0xaa   :  { %1771 = vmatprep.subr.bf16.mxu0 %v1770_v22  ;;  %915 = vmatmul.mubr.f32.vlgmr.msra.gmra.mrb[2].mxu1 %v2390_v17  ;;  %v213_v17 = vld [vmem:[#allocation4 + $0x4f8] sm:$0xff]  ;;  %v482_v22 = vld [vmem:[#allocation4 + $0xd60] sm:$0xff]  ;;  %v1810_v20 = vpack.c.bf16 %v523_v10, %v519_v9  ;;  %v563_v9 = vld [vmem:[#allocation4 + $0xfe8] sm:$0xff] }
  0xab   :  { %1901 = vmatpush1.bf16.msra.mxu1 %v1900_v30  ;;  %985 = vmatprep.mubr.f32.mxu1 %v2387_v19  ;;  %v1910_v16 = vpack.c.bf16 %v213_v17, %v209_v51  ;;  %v1784_v19 = vpack.c.bf16 %v466_v60, %v462_v56  ;;  %v1792_v30 = vpack.c.bf16 %v482_v22, %v478_v15  ;;  %v253_v51 = vld [vmem:[#allocation4 + $0x638] sm:$0xff]  ;;  %v503_v17 = vld [vmem:[#allocation4 + $0xe08] sm:$0xff]  ;;  %v248_v56 = vld [vmem:[#allocation4 + $0x610] sm:$0xff] }
  0xac   :  { %773 = vmatmul.mubr.f32.vlgmr.msra.gmra.mrb[0].mxu0 %v2397_v29  ;;  %1903 = vmatprep.subr.bf16.mxu1 %v1902_v32  ;;  %v486_v32 = vld [vmem:[#allocation4 + $0xd80] sm:$0xff]  ;;  %v1802_v58 = vpack.c.bf16 %v507_v52, %v503_v17  ;;  %v257_v60 = vld [vmem:[#allocation4 + $0x658] sm:$0xff]  ;;  %v1932_v0 = vpack.c.bf16 %v252_v57, %v248_v56  ;;  %v264_v15 = vld [vmem:[#allocation4 + $0x690] sm:$0xff] }
  0xad   :  { %1773 = vmatpush1.bf16.msra.mxu0 %v1772_v31  ;;  %843 = vmatprep.mubr.f32.mxu0 %v2400_v42  ;;  %v1922_v31 = vpack.c.bf16 %v237_v24, %v233_v23  ;;  %v273_v22 = vld [vmem:[#allocation4 + $0x6d8] sm:$0xff]  ;;  %v527_v24 = vld [vmem:[#allocation4 + $0xec8] sm:$0xff]  ;;  %v1940_v26 = vpack.c.bf16 %v268_v18, %v264_v15  ;;  %v292_v56 = vld [vmem:[#allocation4 + $0x770] sm:$0xff] }
  0xae   :  { %1775 = vmatprep.subr.bf16.mxu0 %v1774_v36  ;;  %v490_v36 = vld [vmem:[#allocation4 + $0xda0] sm:$0xff]  ;;  %v277_v23 = vld [vmem:[#allocation4 + $0x6f8] sm:$0xff]  ;;  %v1814_v34 = vpack.c.bf16 %v531_v25, %v527_v24  ;;  %v547_v17 = vld [vmem:[#allocation4 + $0xf68] sm:$0xff] }
  0xaf   :  { %1905 = vmatpush1.bf16.msra.mxu1 %v1904_v43  ;;  %v1796_v43 = vpack.c.bf16 %v490_v36, %v486_v32  ;;  %v272_v32 = vld [vmem:[#allocation4 + $0x6d0] sm:$0xff]  ;;  %v281_v36 = vld [vmem:[#allocation4 + $0x718] sm:$0xff] }
  0xb0   :  { %1907 = vmatprep.subr.bf16.mxu1 %v1906_v45  ;;  %v494_v45 = vld [vmem:[#allocation4 + $0xdc0] sm:$0xff]  ;;  %v1944_v40 = vpack.c.bf16 %v276_v33, %v272_v32  ;;  %v308_v15 = vld [vmem:[#allocation4 + $0x7f0] sm:$0xff] }
  0xb1   :  { %1777 = vmatpush1.bf16.msra.mxu0 %v1776_v44  ;;  %v1926_v44 = vpack.c.bf16 %v245_v38, %v241_v37  ;;  %v285_v37 = vld [vmem:[#allocation4 + $0x738] sm:$0xff]  ;;  %v535_v38 = vld [vmem:[#allocation4 + $0xf08] sm:$0xff]  ;;  %v2405_v33 = vld [vmem:[#allocation2 + $0x30] sm:$0xff] }
  0xb2   :  { %1779 = vmatprep.subr.bf16.mxu0 %v1778_v49  ;;  %v498_v49 = vld [vmem:[#allocation4 + $0xde0] sm:$0xff]  ;;  %v1818_v47 = vpack.c.bf16 %v539_v39, %v535_v38  ;;  %v333_v38 = vld [vmem:[#allocation4 + $0x8b8] sm:$0xff]  ;;  %v2270_v39 = vld [vmem:[#allocation2 + $0x10] sm:$0xff] }
  0xb3   :  { %1909 = vmatpush1.bf16.msra.mxu1 %v1908_v54  ;;  %v1800_v54 = vpack.c.bf16 %v498_v49, %v494_v45  ;;  %v280_v45 = vld [vmem:[#allocation4 + $0x710] sm:$0xff]  ;;  %v289_v49 = vld [vmem:[#allocation4 + $0x758] sm:$0xff] }
  0xb4   :  { %1911 = vmatprep.subr.bf16.mxu1 %v1910_v16  ;;  %v502_v16 = vld [vmem:[#allocation4 + $0xe00] sm:$0xff]  ;;  %v1948_v52 = vpack.c.bf16 %v284_v46, %v280_v45 }
  0xb5   :  { %1781 = vmatpush1.bf16.msra.mxu0 %v1780_v55  ;;  %v1930_v55 = vpack.c.bf16 %v253_v51, %v249_v50  ;;  %v293_v50 = vld [vmem:[#allocation4 + $0x778] sm:$0xff]  ;;  %v543_v51 = vld [vmem:[#allocation4 + $0xf48] sm:$0xff]  ;;  %v1146_v45 = vld [vmem:[%s2907_s2] sm:$0xff] }
  0xb6   :  { %1783 = vmatprep.subr.bf16.mxu0 %v1782_v59  ;;  %v506_v59 = vld [vmem:[#allocation4 + $0xe20] sm:$0xff]  ;;  %v1822_v57 = vpack.c.bf16 %v547_v17, %v543_v51 }
  0xb7   :  { %1913 = vmatpush1.bf16.msra.mxu1 %v1912_v1  ;;  %v1804_v1 = vpack.c.bf16 %v506_v59, %v502_v16  ;;  %v288_v16 = vld [vmem:[#allocation4 + $0x750] sm:$0xff]  ;;  %v297_v59 = vld [vmem:[#allocation4 + $0x798] sm:$0xff] }
  0xb8   :  { %1915 = vmatprep.subr.bf16.mxu1 %v1914_v2  ;;  %v510_v2 = vld [vmem:[#allocation4 + $0xe40] sm:$0xff]  ;;  %v1952_v63 = vpack.c.bf16 %v292_v56, %v288_v16  ;;  %v337_v16 = vld [vmem:[#allocation4 + $0x8d8] sm:$0xff] }
  0xb9   :  { %1785 = vmatpush1.bf16.msra.mxu0 %v1784_v19  ;;  %v1934_v19 = vpack.c.bf16 %v261_v61, %v257_v60  ;;  %v301_v60 = vld [vmem:[#allocation4 + $0x7b8] sm:$0xff]  ;;  %v551_v61 = vld [vmem:[#allocation4 + $0xf88] sm:$0xff] }
  0xba   :  { %1787 = vmatprep.subr.bf16.mxu0 %v1786_v6  ;;  %v514_v6 = vld [vmem:[#allocation4 + $0xe60] sm:$0xff]  ;;  %v1826_v4 = vpack.c.bf16 %v555_v62, %v551_v61  ;;  %v341_v56 = vld [vmem:[#allocation4 + $0x8f8] sm:$0xff]  ;;  %v1156_v62 = vld [vmem:[%s2907_s2 + $0x50] sm:$0xff] }
  0xbb   :  { %1917 = vmatpush1.bf16.msra.mxu1 %v1916_v12  ;;  %v1808_v12 = vpack.c.bf16 %v514_v6, %v510_v2  ;;  %v296_v2 = vld [vmem:[#allocation4 + $0x790] sm:$0xff]  ;;  %v305_v6 = vld [vmem:[#allocation4 + $0x7d8] sm:$0xff]  ;;  %v1154_v61 = vld [vmem:[%s2907_s2 + $0x40] sm:$0xff] }
  0xbc   :  { %1919 = vmatprep.subr.bf16.mxu1 %v1918_v14  ;;  %v518_v14 = vld [vmem:[#allocation4 + $0xe80] sm:$0xff]  ;;  %v1956_v10 = vpack.c.bf16 %v300_v3, %v296_v2  ;;  %v345_v2 = vld [vmem:[#allocation4 + $0x918] sm:$0xff] }
  0xbd   :  { %1789 = vmatpush1.bf16.msra.mxu0 %v1788_v13  ;;  %v1938_v13 = vpack.c.bf16 %v269_v8, %v265_v7  ;;  %v309_v7 = vld [vmem:[#allocation4 + $0x7f8] sm:$0xff]  ;;  %v559_v8 = vld [vmem:[#allocation4 + $0xfc8] sm:$0xff] }
  0xbe   :  { %1791 = vmatprep.subr.bf16.mxu0 %v1790_v21  ;;  %v522_v21 = vld [vmem:[#allocation4 + $0xea0] sm:$0xff]  ;;  %v1830_v18 = vpack.c.bf16 %v563_v9, %v559_v8  ;;  %v349_v3 = vld [vmem:[#allocation4 + $0x938] sm:$0xff]  ;;  %v1160_v9 = vld [vmem:[%s2907_s2 + $0x70] sm:$0xff] }
  0xbf   :  { %1921 = vmatpush1.bf16.msra.mxu1 %v1920_v27  ;;  %v1812_v27 = vpack.c.bf16 %v522_v21, %v518_v14  ;;  %v304_v14 = vld [vmem:[#allocation4 + $0x7d0] sm:$0xff]  ;;  %v313_v21 = vld [vmem:[#allocation4 + $0x818] sm:$0xff]  ;;  %v1158_v8 = vld [vmem:[%s2907_s2 + $0x60] sm:$0xff] }
  0xc0   :  { %1923 = vmatprep.subr.bf16.mxu1 %v1922_v31  ;;  %v526_v31 = vld [vmem:[#allocation4 + $0xec0] sm:$0xff] }
  0xc1   :  { %1793 = vmatpush1.bf16.msra.mxu0 %v1792_v30  ;;  %v1942_v30 = vpack.c.bf16 %v277_v23, %v273_v22  ;;  %v317_v22 = vld [vmem:[#allocation4 + $0x838] sm:$0xff]  ;;  %v1960_v23 = vpack.c.bf16 %v308_v15, %v304_v14 }
  0xc2   :  { %1795 = vmatprep.subr.bf16.mxu0 %v1794_v35  ;;  %v530_v35 = vld [vmem:[#allocation4 + $0xee0] sm:$0xff]  ;;  %v1962_v25 = vpack.c.bf16 %v317_v22, %v313_v21  ;;  %v353_v14 = vld [vmem:[#allocation4 + $0x958] sm:$0xff]  ;;  %v352_v21 = vld [vmem:[#allocation4 + $0x950] sm:$0xff] }
  0xc3   :  { %1925 = vmatpush1.bf16.msra.mxu1 %v1924_v41  ;;  %v1816_v41 = vpack.c.bf16 %v530_v35, %v526_v31  ;;  %v325_v31 = vld [vmem:[#allocation4 + $0x878] sm:$0xff]  ;;  %v320_v35 = vld [vmem:[#allocation4 + $0x850] sm:$0xff] }
  0xc4   :  { %1927 = vmatprep.subr.bf16.mxu1 %v1926_v44  ;;  %v534_v44 = vld [vmem:[#allocation4 + $0xf00] sm:$0xff]  ;;  %v357_v15 = vld [vmem:[#allocation4 + $0x978] sm:$0xff] }
  0xc5   :  { %1797 = vmatpush1.bf16.msra.mxu0 %v1796_v43  ;;  %v1946_v43 = vpack.c.bf16 %v285_v37, %v281_v36  ;;  %v324_v36 = vld [vmem:[#allocation4 + $0x870] sm:$0xff]  ;;  %v329_v37 = vld [vmem:[#allocation4 + $0x898] sm:$0xff] }
  0xc6   :  { %1799 = vmatprep.subr.bf16.mxu0 %v1798_v48  ;;  %v538_v48 = vld [vmem:[#allocation4 + $0xf20] sm:$0xff]  ;;  %v1968_v46 = vpack.c.bf16 %v324_v36, %v320_v35  ;;  %v1970_v51 = vpack.c.bf16 %v333_v38, %v329_v37  ;;  %v360_v36 = vld [vmem:[#allocation4 + $0x990] sm:$0xff] }
  0xc7   :  { %1929 = vmatpush1.bf16.msra.mxu1 %v1928_v53  ;;  %v1820_v53 = vpack.c.bf16 %v538_v48, %v534_v44  ;;  %v1149_v44 = vld [vmem:[%s2907_s2 + $0x18] sm:$0xff]  ;;  %v1148_v48 = vld [vmem:[%s2907_s2 + $0x10] sm:$0xff]  ;;  %v1166_v38 = vld [vmem:[%s2907_s2 + $0xa0] sm:$0xff] }
  0xc8   :  { %1931 = vmatprep.subr.bf16.mxu1 %v1930_v55  ;;  %v542_v55 = vld [vmem:[#allocation4 + $0xf40] sm:$0xff]  ;;  %v2092_v17 = vpack.c.bf16 %v1148_v48, %v1146_v45  ;;  %v369_v45 = vld [vmem:[#allocation4 + $0x9d8] sm:$0xff] }
  0xc9   :  { %1801 = vmatpush1.bf16.msra.mxu0 %v1800_v54  ;;  %v1950_v54 = vpack.c.bf16 %v293_v50, %v289_v49  ;;  %v1151_v49 = vld [vmem:[%s2907_s2 + $0x28] sm:$0xff]  ;;  %v1153_v50 = vld [vmem:[%s2907_s2 + $0x38] sm:$0xff] }
  0xca   :  { %1803 = vmatprep.subr.bf16.mxu0 %v1802_v58  ;;  %v546_v58 = vld [vmem:[#allocation4 + $0xf60] sm:$0xff] }
  0xcb   :  { %1933 = vmatpush1.bf16.msra.mxu1 %v1932_v0  ;;  %v1824_v0 = vpack.c.bf16 %v546_v58, %v542_v55  ;;  %v1155_v55 = vld [vmem:[%s2907_s2 + $0x48] sm:$0xff] }
  0xcc   :  { %1935 = vmatprep.subr.bf16.mxu1 %v1934_v19  ;;  %v550_v19 = vld [vmem:[#allocation4 + $0xf80] sm:$0xff] }
  0xcd   :  { %1805 = vmatpush1.bf16.msra.mxu0 %v1804_v1  ;;  %v1954_v1 = vpack.c.bf16 %v301_v60, %v297_v59  ;;  %v336_v59 = vld [vmem:[#allocation4 + $0x8d0] sm:$0xff] }
  0xce   :  { %1807 = vmatprep.subr.bf16.mxu0 %v1806_v5  ;;  %v554_v5 = vld [vmem:[#allocation4 + $0xfa0] sm:$0xff] }
  0xcf   :  { %1937 = vmatpush1.bf16.msra.mxu1 %v1936_v11  ;;  %v1828_v11 = vpack.c.bf16 %v554_v5, %v550_v19  ;;  %v1161_v19 = vld [vmem:[%s2907_s2 + $0x78] sm:$0xff] }
  0xd0   :  { %1939 = vmatprep.subr.bf16.mxu1 %v1938_v13  ;;  %v558_v13 = vld [vmem:[#allocation4 + $0xfc0] sm:$0xff] }
  0xd1   :  { %1809 = vmatpush1.bf16.msra.mxu0 %v1808_v12  ;;  %v1958_v12 = vpack.c.bf16 %v309_v7, %v305_v6  ;;  %v344_v6 = vld [vmem:[#allocation4 + $0x910] sm:$0xff] }
  0xd2   :  { %1811 = vmatprep.subr.bf16.mxu0 %v1810_v20  ;;  %v562_v20 = vld [vmem:[#allocation4 + $0xfe0] sm:$0xff] }
  0xd3   :  { %1941 = vmatpush1.bf16.msra.mxu1 %v1940_v26  ;;  %v1832_v24 = vpack.c.bf16 %v562_v20, %v558_v13  ;;  %v312_v26 = vld [vmem:[#allocation4 + $0x810] sm:$0xff]  ;;  %v1165_v13 = vld [vmem:[%s2907_s2 + $0x98] sm:$0xff] }
  0xd4   :  { %1943 = vmatprep.subr.bf16.mxu1 %v1942_v30  ;;  %v321_v30 = vld [vmem:[#allocation4 + $0x858] sm:$0xff] }
  0xd5   :  { %1813 = vmatpush1.bf16.msra.mxu0 %v1812_v27  ;;  %v316_v27 = vld [vmem:[#allocation4 + $0x830] sm:$0xff] }
  0xd6   :  { %1815 = vmatprep.subr.bf16.mxu0 %v1814_v34  ;;  %v1964_v32 = vpack.c.bf16 %v316_v27, %v312_v26  ;;  %v1966_v34 = vpack.c.bf16 %v325_v31, %v321_v30  ;;  %v356_v26 = vld [vmem:[#allocation4 + $0x970] sm:$0xff]  ;;  %v1167_v27 = vld [vmem:[%s2907_s2 + $0xa8] sm:$0xff]  ;;  %v1169_v30 = vld [vmem:[%s2907_s2 + $0xb8] sm:$0xff] }
  0xd7   :  { %1945 = vmatpush1.bf16.msra.mxu1 %v1944_v40  ;;  %v328_v40 = vld [vmem:[#allocation4 + $0x890] sm:$0xff]  ;;  %v361_v31 = vld [vmem:[#allocation4 + $0x998] sm:$0xff]  ;;  %v1984_v35 = vpack.c.bf16 %v356_v26, %v352_v21  ;;  %v2110_v37 = vpack.c.bf16 %v1169_v30, %v1167_v27  ;;  %v1187_v26 = vld [vmem:[%s2907_s2 + $0x148] sm:$0xff] }
  0xd8   :  { %1947 = vmatprep.subr.bf16.mxu1 %v1946_v43  ;;  %v1147_v43 = vld [vmem:[%s2907_s2 + $0x8] sm:$0xff]  ;;  %v1189_v27 = vld [vmem:[%s2907_s2 + $0x158] sm:$0xff] }
  0xd9   :  { %1817 = vmatpush1.bf16.msra.mxu0 %v1816_v41  ;;  %v332_v41 = vld [vmem:[#allocation4 + $0x8b0] sm:$0xff]  ;;  %v401_v30 = vld [vmem:[#allocation4 + $0xad8] sm:$0xff] }
  0xda   :  { %1819 = vmatprep.subr.bf16.mxu0 %v1818_v47  ;;  %v2090_v47 = vpack.c.bf16 %v1149_v44, %v1147_v43  ;;  %v1972_v58 = vpack.c.bf16 %v332_v41, %v328_v40  ;;  %v364_v41 = vld [vmem:[#allocation4 + $0x9b0] sm:$0xff]  ;;  %v1171_v43 = vld [vmem:[%s2907_s2 + $0xc8] sm:$0xff]  ;;  %v1173_v44 = vld [vmem:[%s2907_s2 + $0xd8] sm:$0xff] }
  0xdb   :  { %1949 = vmatpush1.bf16.msra.mxu1 %v1948_v52  ;;  %v2094_v52 = vpack.c.bf16 %v1153_v50, %v1151_v49  ;;  %v1988_v48 = vpack.c.bf16 %v364_v41, %v360_v36  ;;  %v368_v49 = vld [vmem:[#allocation4 + $0x9d0] sm:$0xff]  ;;  %v2114_v50 = vpack.c.bf16 %v1173_v44, %v1171_v43  ;;  %v2130_v36 = vpack.c.bf16 %v1189_v27, %v1187_v26  ;;  %v1191_v41 = vld [vmem:[%s2907_s2 + $0x168] sm:$0xff]  ;;  %v1193_v43 = vld [vmem:[%s2907_s2 + $0x178] sm:$0xff] }
  0xdc   :  { %1951 = vmatprep.subr.bf16.mxu1 %v1950_v54  ;;  %v1152_v54 = vld [vmem:[%s2907_s2 + $0x30] sm:$0xff]  ;;  %v409_v44 = vld [vmem:[#allocation4 + $0xb18] sm:$0xff] }
  0xdd   :  { %1821 = vmatpush1.bf16.msra.mxu0 %v1820_v53  ;;  %v1150_v53 = vld [vmem:[%s2907_s2 + $0x20] sm:$0xff]  ;;  %v449_v26 = vld [vmem:[#allocation4 + $0xc58] sm:$0xff] }
  0xde   :  { %1823 = vmatprep.subr.bf16.mxu0 %v1822_v57  ;;  %v2096_v57 = vpack.c.bf16 %v1152_v54, %v1150_v53  ;;  %v372_v53 = vld [vmem:[#allocation4 + $0x9f0] sm:$0xff]  ;;  %v1175_v54 = vld [vmem:[%s2907_s2 + $0xe8] sm:$0xff]  ;;  %v453_v27 = vld [vmem:[#allocation4 + $0xc78] sm:$0xff] }
  0xdf   :  { %1953 = vmatpush1.bf16.msra.mxu1 %v1952_v63  ;;  %v1974_v63 = vpack.c.bf16 %v341_v56, %v337_v16  ;;  %v377_v16 = vld [vmem:[#allocation4 + $0xa18] sm:$0xff] }
  0xe0   :  { %1955 = vmatprep.subr.bf16.mxu1 %v1954_v1  ;;  %v1159_v1 = vld [vmem:[%s2907_s2 + $0x68] sm:$0xff]  ;;  %v381_v56 = vld [vmem:[#allocation4 + $0xa38] sm:$0xff] }
  0xe1   :  { %1825 = vmatpush1.bf16.msra.mxu0 %v1824_v0  ;;  %v340_v0 = vld [vmem:[#allocation4 + $0x8f0] sm:$0xff]  ;;  %v2102_v7 = vpack.c.bf16 %v1161_v19, %v1159_v1  ;;  %v1181_v1 = vld [vmem:[%s2907_s2 + $0x118] sm:$0xff] }
  0xe2   :  { %1827 = vmatprep.subr.bf16.mxu0 %v1826_v4  ;;  %v2100_v4 = vpack.c.bf16 %v1156_v62, %v1154_v61  ;;  %v1976_v5 = vpack.c.bf16 %v340_v0, %v336_v59  ;;  %v1176_v61 = vld [vmem:[%s2907_s2 + $0xf0] sm:$0xff]  ;;  %v1994_v62 = vpack.c.bf16 %v381_v56, %v377_v16  ;;  %v1179_v0 = vld [vmem:[%s2907_s2 + $0x108] sm:$0xff]  ;;  %v385_v19 = vld [vmem:[#allocation4 + $0xa58] sm:$0xff] }
  0xe3   :  { %1957 = vmatpush1.bf16.msra.mxu1 %v1956_v10  ;;  %v1978_v10 = vpack.c.bf16 %v349_v3, %v345_v2  ;;  %v389_v2 = vld [vmem:[#allocation4 + $0xa78] sm:$0xff] }
  0xe4   :  { %1959 = vmatprep.subr.bf16.mxu1 %v1958_v12  ;;  %v1163_v12 = vld [vmem:[%s2907_s2 + $0x88] sm:$0xff]  ;;  %v421_v16 = vld [vmem:[#allocation4 + $0xb78] sm:$0xff] }
  0xe5   :  { %1829 = vmatpush1.bf16.msra.mxu0 %v1828_v11  ;;  %v348_v11 = vld [vmem:[#allocation4 + $0x930] sm:$0xff]  ;;  %v2106_v22 = vpack.c.bf16 %v1165_v13, %v1163_v12  ;;  %v1185_v12 = vld [vmem:[%s2907_s2 + $0x138] sm:$0xff] }
  0xe6   :  { %1831 = vmatprep.subr.bf16.mxu0 %v1830_v18  ;;  %v2104_v18 = vpack.c.bf16 %v1160_v9, %v1158_v8  ;;  %v1980_v20 = vpack.c.bf16 %v348_v11, %v344_v6  ;;  %v2122_v6 = vpack.c.bf16 %v1181_v1, %v1179_v0  ;;  %v1180_v8 = vld [vmem:[%s2907_s2 + $0x110] sm:$0xff]  ;;  %v1998_v9 = vpack.c.bf16 %v389_v2, %v385_v19  ;;  %v1183_v11 = vld [vmem:[%s2907_s2 + $0x128] sm:$0xff]  ;;  %v393_v13 = vld [vmem:[#allocation4 + $0xa98] sm:$0xff] }
  0xe7   :  { %1961 = vmatpush1.bf16.msra.mxu1 %v1960_v23  ;;  %v1162_v23 = vld [vmem:[%s2907_s2 + $0x80] sm:$0xff]  ;;  %v2126_v21 = vpack.c.bf16 %v1185_v12, %v1183_v11  ;;  %v1201_v0 = vld [vmem:[%s2907_s2 + $0x1b8] sm:$0xff] }
  0xe8   :  { %1963 = vmatprep.subr.bf16.mxu1 %v1962_v25  ;;  %v1982_v25 = vpack.c.bf16 %v357_v15, %v353_v14  ;;  %v397_v14 = vld [vmem:[#allocation4 + $0xab8] sm:$0xff] }
  0xe9   :  { %1833 = vmatpush1.bf16.msra.mxu0 %v1832_v24  ;;  %v1164_v24 = vld [vmem:[%s2907_s2 + $0x90] sm:$0xff]  ;;  %v425_v1 = vld [vmem:[#allocation4 + $0xb98] sm:$0xff] }
  0xea   :  { %986 = vmatmul.mubr.f32.vlgmr.msra.gmra.mrb[2].mxu1 %v2270_v39  ;;  %2091 = vmatprep.subr.bf16.mxu0 %v2090_v47  ;;  %v1168_v39 = vld [vmem:[%s2907_s2 + $0xb0] sm:$0xff]  ;;  %v429_v19 = vld [vmem:[#allocation4 + $0xbb8] sm:$0xff] }
  0xeb   :  { %1965 = vmatpush1.bf16.msra.mxu1 %v1964_v32  ;;  %1056 = vmatprep.mubr.f32.mxu1 %v2394_v28  ;;  %v1157_v28 = vld [vmem:[%s2907_s2 + $0x58] sm:$0xff]  ;;  %v2112_v47 = vpack.c.bf16 %v1168_v39, %v1166_v38  ;;  %v1188_v38 = vld [vmem:[%s2907_s2 + $0x150] sm:$0xff] }
  0xec   :  { %844 = vmatmul.mubr.f32.vlgmr.msra.gmra.mrb[0].mxu0 %v2405_v33  ;;  %1967 = vmatprep.subr.bf16.mxu1 %v1966_v34  ;;  %v2098_v60 = vpack.c.bf16 %v1157_v28, %v1155_v55  ;;  %v365_v32 = vld [vmem:[#allocation4 + $0x9b8] sm:$0xff]  ;;  %v2108_v34 = vpack.c.bf16 %v1164_v24, %v1162_v23  ;;  %v1184_v23 = vld [vmem:[%s2907_s2 + $0x130] sm:$0xff]  ;;  %v2002_v24 = vpack.c.bf16 %v397_v14, %v393_v13 }
  0xed   :  { %2093 = vmatpush1.bf16.msra.mxu0 %v2092_v17  ;;  %v1986_v40 = vpack.c.bf16 %v365_v32, %v361_v31  ;;  %v1172_v17 = vld [vmem:[%s2907_s2 + $0xd0] sm:$0xff]  ;;  %v1177_v55 = vld [vmem:[%s2907_s2 + $0xf8] sm:$0xff] }
  0xee   :  { %2095 = vmatprep.subr.bf16.mxu0 %v2094_v52  ;;  %v2118_v59 = vpack.c.bf16 %v1177_v55, %v1175_v54  ;;  %v405_v31 = vld [vmem:[#allocation4 + $0xaf8] sm:$0xff] }
  0xef   :  { %1969 = vmatpush1.bf16.msra.mxu1 %v1968_v46  ;;  %v373_v46 = vld [vmem:[#allocation4 + $0x9f8] sm:$0xff]  ;;  %v2006_v39 = vpack.c.bf16 %v405_v31, %v401_v30  ;;  %v2030_v31 = vpack.c.bf16 %v453_v27, %v449_v26  ;;  %v1211_v27 = vld [vmem:[%s2907_s2 + $0x208] sm:$0xff] }
  0xf0   :  { %1971 = vmatprep.subr.bf16.mxu1 %v1970_v51  ;;  %v1170_v51 = vld [vmem:[%s2907_s2 + $0xc0] sm:$0xff]  ;;  %v1990_v52 = vpack.c.bf16 %v373_v46, %v369_v45  ;;  %v413_v45 = vld [vmem:[#allocation4 + $0xb38] sm:$0xff] }
  0xf1   :  { %2097 = vmatpush1.bf16.msra.mxu0 %v2096_v57  ;;  %v2116_v28 = vpack.c.bf16 %v1172_v17, %v1170_v51  ;;  %v1992_v57 = vpack.c.bf16 %v372_v53, %v368_v49  ;;  %v2134_v49 = vpack.c.bf16 %v1193_v43, %v1191_v41  ;;  %v1192_v51 = vld [vmem:[%s2907_s2 + $0x170] sm:$0xff]  ;;  %v2010_v17 = vpack.c.bf16 %v413_v45, %v409_v44  ;;  %v1195_v53 = vld [vmem:[%s2907_s2 + $0x188] sm:$0xff]  ;;  %v1197_v54 = vld [vmem:[%s2907_s2 + $0x198] sm:$0xff] }
  0xf2   :  { %2099 = vmatprep.subr.bf16.mxu0 %v2098_v60  ;;  %v1174_v60 = vld [vmem:[%s2907_s2 + $0xe0] sm:$0xff]  ;;  %v417_v55 = vld [vmem:[#allocation4 + $0xb58] sm:$0xff] }
  0xf3   :  { %1973 = vmatpush1.bf16.msra.mxu1 %v1972_v58  ;;  %v376_v58 = vld [vmem:[#allocation4 + $0xa10] sm:$0xff]  ;;  %v2120_v3 = vpack.c.bf16 %v1176_v61, %v1174_v60  ;;  %v2014_v61 = vpack.c.bf16 %v421_v16, %v417_v55  ;;  %v437_v11 = vld [vmem:[#allocation4 + $0xbf8] sm:$0xff] }
  0xf4   :  { %1975 = vmatprep.subr.bf16.mxu1 %v1974_v63  ;;  %v380_v63 = vld [vmem:[#allocation4 + $0xa30] sm:$0xff]  ;;  %v465_v41 = vld [vmem:[#allocation4 + $0xcd8] sm:$0xff] }
  0xf5   :  { %2101 = vmatpush1.bf16.msra.mxu0 %v2100_v4  ;;  %v1996_v4 = vpack.c.bf16 %v380_v63, %v376_v58  ;;  %v2138_v58 = vpack.c.bf16 %v1197_v54, %v1195_v53  ;;  %v1196_v60 = vld [vmem:[%s2907_s2 + $0x190] sm:$0xff]  ;;  %v1199_v63 = vld [vmem:[%s2907_s2 + $0x1a8] sm:$0xff]  ;;  %v469_v43 = vld [vmem:[#allocation4 + $0xcf8] sm:$0xff] }
  0xf6   :  { %2103 = vmatprep.subr.bf16.mxu0 %v2102_v7  ;;  %v1178_v7 = vld [vmem:[%s2907_s2 + $0x100] sm:$0xff]  ;;  %v2038_v45 = vpack.c.bf16 %v469_v43, %v465_v41  ;;  %v480_v55 = vld [vmem:[#allocation4 + $0xd50] sm:$0xff]  ;;  %v517_v26 = vld [vmem:[#allocation4 + $0xe78] sm:$0xff] }
  0xf7   :  { %1977 = vmatpush1.bf16.msra.mxu1 %v1976_v5  ;;  %v384_v5 = vld [vmem:[#allocation4 + $0xa50] sm:$0xff]  ;;  %v2124_v15 = vpack.c.bf16 %v1180_v8, %v1178_v7  ;;  %v2018_v7 = vpack.c.bf16 %v429_v19, %v425_v1 }
  0xf8   :  { %1979 = vmatprep.subr.bf16.mxu1 %v1978_v10  ;;  %v388_v10 = vld [vmem:[#allocation4 + $0xa70] sm:$0xff] }
  0xf9   :  { %2105 = vmatpush1.bf16.msra.mxu0 %v2104_v18  ;;  %v2000_v18 = vpack.c.bf16 %v388_v10, %v384_v5  ;;  %v1198_v5 = vld [vmem:[%s2907_s2 + $0x1a0] sm:$0xff]  ;;  %v424_v8 = vld [vmem:[#allocation4 + $0xb90] sm:$0xff]  ;;  %v433_v10 = vld [vmem:[#allocation4 + $0xbd8] sm:$0xff] }
  0xfa   :  { %2107 = vmatprep.subr.bf16.mxu0 %v2106_v22  ;;  %v1182_v22 = vld [vmem:[%s2907_s2 + $0x120] sm:$0xff]  ;;  %v2022_v14 = vpack.c.bf16 %v437_v11, %v433_v10  ;;  %v484_v16 = vld [vmem:[#allocation4 + $0xd70] sm:$0xff] }
  0xfb   :  { %1981 = vmatpush1.bf16.msra.mxu1 %v1980_v20  ;;  %v392_v20 = vld [vmem:[#allocation4 + $0xa90] sm:$0xff]  ;;  %v2128_v32 = vpack.c.bf16 %v1184_v23, %v1182_v22 }
  0xfc   :  { %1983 = vmatprep.subr.bf16.mxu1 %v1982_v25  ;;  %v396_v25 = vld [vmem:[#allocation4 + $0xab0] sm:$0xff] }
  0xfd   :  { %2109 = vmatpush1.bf16.msra.mxu0 %v2108_v34  ;;  %v2004_v34 = vpack.c.bf16 %v396_v25, %v392_v20  ;;  %v441_v20 = vld [vmem:[#allocation4 + $0xc18] sm:$0xff]  ;;  %v444_v25 = vld [vmem:[#allocation4 + $0xc30] sm:$0xff] }
  0xfe   :  { %2111 = vmatprep.subr.bf16.mxu0 %v2110_v37  ;;  %v1186_v37 = vld [vmem:[%s2907_s2 + $0x140] sm:$0xff]  ;;  %v1204_v1 = vld [vmem:[%s2907_s2 + $0x1d0] sm:$0xff] }
  0xff   :  { %1985 = vmatpush1.bf16.msra.mxu1 %v1984_v35  ;;  %v400_v35 = vld [vmem:[#allocation4 + $0xad0] sm:$0xff]  ;;  %v2132_v46 = vpack.c.bf16 %v1188_v38, %v1186_v37 }
 0x100   :  { %1987 = vmatprep.subr.bf16.mxu1 %v1986_v40  ;;  %v404_v40 = vld [vmem:[#allocation4 + $0xaf0] sm:$0xff] }
 0x101   :  { %2113 = vmatpush1.bf16.msra.mxu0 %v2112_v47  ;;  %v2008_v47 = vpack.c.bf16 %v404_v40, %v400_v35  ;;  %v457_v35 = vld [vmem:[#allocation4 + $0xc98] sm:$0xff]  ;;  %v460_v40 = vld [vmem:[#allocation4 + $0xcb0] sm:$0xff] }
 0x102   :  { %2115 = vmatprep.subr.bf16.mxu0 %v2114_v50  ;;  %v1190_v50 = vld [vmem:[%s2907_s2 + $0x160] sm:$0xff]  ;;  %v500_v11 = vld [vmem:[#allocation4 + $0xdf0] sm:$0xff] }
 0x103   :  { %1989 = vmatpush1.bf16.msra.mxu1 %v1988_v48  ;;  %v408_v48 = vld [vmem:[#allocation4 + $0xb10] sm:$0xff]  ;;  %v2136_v56 = vpack.c.bf16 %v1192_v51, %v1190_v50 }
 0x104   :  { %1991 = vmatprep.subr.bf16.mxu1 %v1990_v52  ;;  %v412_v52 = vld [vmem:[#allocation4 + $0xb30] sm:$0xff] }
 0x105   :  { %2117 = vmatpush1.bf16.msra.mxu0 %v2116_v28  ;;  %v2012_v28 = vpack.c.bf16 %v412_v52, %v408_v48  ;;  %v473_v48 = vld [vmem:[#allocation4 + $0xd18] sm:$0xff]  ;;  %v472_v51 = vld [vmem:[#allocation4 + $0xd10] sm:$0xff] }
 0x106   :  { %2119 = vmatprep.subr.bf16.mxu0 %v2118_v59  ;;  %v1194_v59 = vld [vmem:[%s2907_s2 + $0x180] sm:$0xff]  ;;  %v485_v52 = vld [vmem:[#allocation4 + $0xd78] sm:$0xff]  ;;  %v520_v41 = vld [vmem:[#allocation4 + $0xe90] sm:$0xff] }
 0x107   :  { %1993 = vmatpush1.bf16.msra.mxu1 %v1992_v57  ;;  %v416_v57 = vld [vmem:[#allocation4 + $0xb50] sm:$0xff]  ;;  %v2140_v2 = vpack.c.bf16 %v1196_v60, %v1194_v59  ;;  %v1203_v59 = vld [vmem:[%s2907_s2 + $0x1c8] sm:$0xff]  ;;  %v1205_v60 = vld [vmem:[%s2907_s2 + $0x1d8] sm:$0xff] }
 0x108   :  { %1995 = vmatprep.subr.bf16.mxu1 %v1994_v62  ;;  %v420_v62 = vld [vmem:[#allocation4 + $0xb70] sm:$0xff] }
 0x109   :  { %2121 = vmatpush1.bf16.msra.mxu0 %v2120_v3  ;;  %v2016_v3 = vpack.c.bf16 %v420_v62, %v416_v57  ;;  %v2048_v57 = vpack.c.bf16 %v484_v16, %v480_v55  ;;  %v492_v62 = vld [vmem:[#allocation4 + $0xdb0] sm:$0xff] }
 0x10a   :  { %2123 = vmatprep.subr.bf16.mxu0 %v2122_v6  ;;  %v1200_v6 = vld [vmem:[%s2907_s2 + $0x1b0] sm:$0xff] }
 0x10b   :  { %1997 = vmatpush1.bf16.msra.mxu1 %v1996_v4  ;;  %v2142_v4 = vpack.c.bf16 %v1201_v0, %v1199_v63  ;;  %v2144_v12 = vpack.c.bf16 %v1200_v6, %v1198_v5  ;;  %v2146_v63 = vpack.c.bf16 %v1205_v60, %v1203_v59  ;;  %v1202_v0 = vld [vmem:[%s2907_s2 + $0x1c0] sm:$0xff]  ;;  %v524_v43 = vld [vmem:[#allocation4 + $0xeb0] sm:$0xff] }
 0x10c   :  { %1999 = vmatprep.subr.bf16.mxu1 %v1998_v9  ;;  %v428_v9 = vld [vmem:[#allocation4 + $0xbb0] sm:$0xff] }
 0x10d   :  { %2125 = vmatpush1.bf16.msra.mxu0 %v2124_v15  ;;  %v2020_v13 = vpack.c.bf16 %v428_v9, %v424_v8  ;;  %v432_v15 = vld [vmem:[#allocation4 + $0xbd0] sm:$0xff]  ;;  %v1207_v8 = vld [vmem:[%s2907_s2 + $0x1e8] sm:$0xff]  ;;  %v1209_v9 = vld [vmem:[%s2907_s2 + $0x1f8] sm:$0xff] }
 0x10e   :  { %2127 = vmatprep.subr.bf16.mxu0 %v2126_v21  ;;  %v445_v21 = vld [vmem:[#allocation4 + $0xc38] sm:$0xff] }
 0x10f   :  { %2001 = vmatpush1.bf16.msra.mxu1 %v2000_v18  ;;  %v436_v18 = vld [vmem:[#allocation4 + $0xbf0] sm:$0xff]  ;;  %v2026_v23 = vpack.c.bf16 %v445_v21, %v441_v20 }
 0x110   :  { %2003 = vmatprep.subr.bf16.mxu1 %v2002_v24  ;;  %v2024_v22 = vpack.c.bf16 %v436_v18, %v432_v15  ;;  %v440_v24 = vld [vmem:[#allocation4 + $0xc10] sm:$0xff]  ;;  %v505_v15 = vld [vmem:[#allocation4 + $0xe18] sm:$0xff] }
 0x111   :  { %2129 = vmatpush1.bf16.msra.mxu0 %v2128_v32  ;;  %v2028_v30 = vpack.c.bf16 %v444_v25, %v440_v24  ;;  %v448_v32 = vld [vmem:[#allocation4 + $0xc50] sm:$0xff]  ;;  %v509_v18 = vld [vmem:[#allocation4 + $0xe38] sm:$0xff] }
 0x112   :  { %2131 = vmatprep.subr.bf16.mxu0 %v2130_v36  ;;  %v461_v36 = vld [vmem:[#allocation4 + $0xcb8] sm:$0xff]  ;;  %v508_v24 = vld [vmem:[#allocation4 + $0xe30] sm:$0xff] }
 0x113   :  { %2005 = vmatpush1.bf16.msra.mxu1 %v2004_v34  ;;  %v452_v34 = vld [vmem:[#allocation4 + $0xc70] sm:$0xff]  ;;  %v2034_v38 = vpack.c.bf16 %v461_v36, %v457_v35  ;;  %v513_v25 = vld [vmem:[#allocation4 + $0xe58] sm:$0xff] }
 0x114   :  { %2007 = vmatprep.subr.bf16.mxu1 %v2006_v39  ;;  %v2032_v37 = vpack.c.bf16 %v452_v34, %v448_v32  ;;  %v456_v39 = vld [vmem:[#allocation4 + $0xc90] sm:$0xff]  ;;  %v2062_v34 = vpack.c.bf16 %v517_v26, %v513_v25 }
 0x115   :  { %2133 = vmatpush1.bf16.msra.mxu0 %v2132_v46  ;;  %v2036_v44 = vpack.c.bf16 %v460_v40, %v456_v39  ;;  %v464_v46 = vld [vmem:[#allocation4 + $0xcd0] sm:$0xff] }
 0x116   :  { %2135 = vmatprep.subr.bf16.mxu0 %v2134_v49  ;;  %v477_v49 = vld [vmem:[#allocation4 + $0xd38] sm:$0xff]  ;;  %v512_v35 = vld [vmem:[#allocation4 + $0xe50] sm:$0xff] }
 0x117   :  { %2009 = vmatpush1.bf16.msra.mxu1 %v2008_v47  ;;  %v468_v47 = vld [vmem:[#allocation4 + $0xcf0] sm:$0xff]  ;;  %v2042_v50 = vpack.c.bf16 %v477_v49, %v473_v48 }
 0x118   :  { %2011 = vmatprep.subr.bf16.mxu1 %v2010_v17  ;;  %v481_v17 = vld [vmem:[#allocation4 + $0xd58] sm:$0xff]  ;;  %v516_v36 = vld [vmem:[#allocation4 + $0xe70] sm:$0xff] }
 0x119   :  { %2137 = vmatpush1.bf16.msra.mxu0 %v2136_v56  ;;  %v2046_v54 = vpack.c.bf16 %v485_v52, %v481_v17  ;;  %v489_v56 = vld [vmem:[#allocation4 + $0xd98] sm:$0xff]  ;;  %v2064_v39 = vpack.c.bf16 %v516_v36, %v512_v35  ;;  %v528_v48 = vld [vmem:[#allocation4 + $0xed0] sm:$0xff] }
 0x11a   :  { %2139 = vmatprep.subr.bf16.mxu0 %v2138_v58  ;;  %v488_v58 = vld [vmem:[#allocation4 + $0xd90] sm:$0xff] }
 0x11b   :  { %2013 = vmatpush1.bf16.msra.mxu1 %v2012_v28  ;;  %v493_v28 = vld [vmem:[#allocation4 + $0xdb8] sm:$0xff]  ;;  %v2052_v6 = vpack.c.bf16 %v492_v62, %v488_v58  ;;  %v532_v49 = vld [vmem:[#allocation4 + $0xef0] sm:$0xff] }
 0x11c   :  { %2015 = vmatprep.subr.bf16.mxu1 %v2014_v61  ;;  %v2050_v61 = vpack.c.bf16 %v493_v28, %v489_v56  ;;  %v536_v17 = vld [vmem:[#allocation4 + $0xf10] sm:$0xff]  ;;  %v557_v58 = vld [vmem:[#allocation4 + $0xfb8] sm:$0xff] }
 0x11d   :  { %2141 = vmatpush1.bf16.msra.mxu0 %v2140_v2  ;;  %v497_v2 = vld [vmem:[#allocation4 + $0xdd8] sm:$0xff]  ;;  %v540_v52 = vld [vmem:[#allocation4 + $0xf30] sm:$0xff] }
 0x11e   :  { %2143 = vmatprep.subr.bf16.mxu0 %v2142_v4  ;;  %v2148_v4 = vpack.c.bf16 %v1204_v1, %v1202_v0  ;;  %v2076_v55 = vpack.c.bf16 %v540_v52, %v536_v17  ;;  %v544_v56 = vld [vmem:[#allocation4 + $0xf50] sm:$0xff]  ;;  %v565_v0 = vld [vmem:[#allocation4 + $0xff8] sm:$0xff]  ;;  %v1222_v52 = vld [vmem:[%s2907_s2 + $0x260] sm:$0xff] }
 0x11f   :  { %2017 = vmatpush1.bf16.msra.mxu1 %v2016_v3  ;;  %v501_v3 = vld [vmem:[#allocation4 + $0xdf8] sm:$0xff]  ;;  %v548_v28 = vld [vmem:[#allocation4 + $0xf70] sm:$0xff] }
 0x120   :  { %2019 = vmatprep.subr.bf16.mxu1 %v2018_v7  ;;  %v496_v7 = vld [vmem:[#allocation4 + $0xdd0] sm:$0xff]  ;;  %v2054_v10 = vpack.c.bf16 %v501_v3, %v497_v2  ;;  %v2080_v59 = vpack.c.bf16 %v548_v28, %v544_v56 }
 0x121   :  { %2145 = vmatpush1.bf16.msra.mxu0 %v2144_v12  ;;  %v2150_v12 = vpack.c.bf16 %v1209_v9, %v1207_v8  ;;  %v2056_v21 = vpack.c.bf16 %v500_v11, %v496_v7  ;;  %v556_v62 = vld [vmem:[#allocation4 + $0xfb0] sm:$0xff]  ;;  %v1210_v11 = vld [vmem:[%s2907_s2 + $0x200] sm:$0xff] }
 0x122   :  { %2147 = vmatprep.subr.bf16.mxu0 %v2146_v63  ;;  %v561_v63 = vld [vmem:[#allocation4 + $0xfd8] sm:$0xff]  ;;  %v560_v3 = vld [vmem:[#allocation4 + $0xfd0] sm:$0xff] }
 0x123   :  { %2021 = vmatpush1.bf16.msra.mxu1 %v2020_v13  ;;  %v1206_v13 = vld [vmem:[%s2907_s2 + $0x1e0] sm:$0xff]  ;;  %v2086_v2 = vpack.c.bf16 %v565_v0, %v561_v63  ;;  %v1440_v28 = vld [vmem:[%s2909_s4 + $0x30] sm:$0xff] }
 0x124   :  { %2023 = vmatprep.subr.bf16.mxu1 %v2022_v14  ;;  %v1208_v14 = vld [vmem:[%s2907_s2 + $0x1f0] sm:$0xff] }
 0x125   :  { %2149 = vmatpush1.bf16.msra.mxu0 %v2148_v4  ;;  %v2152_v20 = vpack.c.bf16 %v1208_v14, %v1206_v13  ;;  %v564_v4 = vld [vmem:[#allocation4 + $0xff0] sm:$0xff]  ;;  %v1215_v14 = vld [vmem:[%s2907_s2 + $0x228] sm:$0xff] }
 0x126   :  { %2151 = vmatprep.subr.bf16.mxu0 %v2150_v12  ;;  %v1212_v12 = vld [vmem:[%s2907_s2 + $0x210] sm:$0xff] }
 0x127   :  { %2025 = vmatpush1.bf16.msra.mxu1 %v2024_v22  ;;  %v2058_v22 = vpack.c.bf16 %v509_v18, %v505_v15  ;;  %v1216_v15 = vld [vmem:[%s2907_s2 + $0x230] sm:$0xff]  ;;  %v2156_v18 = vpack.c.bf16 %v1212_v12, %v1210_v11  ;;  %v1230_v11 = vld [vmem:[%s2907_s2 + $0x2a0] sm:$0xff] }
 0x128   :  { %2027 = vmatprep.subr.bf16.mxu1 %v2026_v23  ;;  %v504_v23 = vld [vmem:[#allocation4 + $0xe10] sm:$0xff] }
 0x129   :  { %2153 = vmatpush1.bf16.msra.mxu0 %v2152_v20  ;;  %v1219_v20 = vld [vmem:[%s2907_s2 + $0x248] sm:$0xff]  ;;  %v1228_v63 = vld [vmem:[%s2907_s2 + $0x290] sm:$0xff] }
 0x12a   :  { %1057 = vmatmul.mubr.f32.vlgmr.msra.gmra.mrb[2].mxu1 %v2397_v29  ;;  %v2040_v29 = vpack.c.bf16 %v468_v47, %v464_v46  ;;  %v2068_v46 = vpack.c.bf16 %v524_v43, %v520_v41  ;;  %v1218_v43 = vld [vmem:[%s2907_s2 + $0x240] sm:$0xff] }
 0x12b   :  { %2029 = vmatpush1.bf16.msra.mxu1 %v2028_v30  ;;  %1127 = vmatprep.mubr.f32.mxu1 %v2400_v42  ;;  %v476_v42 = vld [vmem:[#allocation4 + $0xd30] sm:$0xff]  ;;  %v1213_v30 = vld [vmem:[%s2907_s2 + $0x218] sm:$0xff] }
 0x12c   :  { %2031 = vmatprep.subr.bf16.mxu1 %v2030_v31  ;;  %v2044_v53 = vpack.c.bf16 %v476_v42, %v472_v51  ;;  %v2060_v31 = vpack.c.bf16 %v508_v24, %v504_v23  ;;  %v2154_v32 = vpack.c.bf16 %v1213_v30, %v1211_v27  ;;  %v2072_v51 = vpack.c.bf16 %v532_v49, %v528_v48  ;;  %v1451_v23 = vld [vmem:[%s2909_s4 + $0x88] sm:$0xff]  ;;  %v1434_v24 = vld [vmem:[%s2909_s4] sm:$0xff] }
 0x12d   :  { %v1435_v30 = vld [vmem:[%s2909_s4 + $0x8] sm:$0xff]  ;;  %v1438_v49 = vld [vmem:[%s2909_s4 + $0x20] sm:$0xff] }
 0x12e   :  { %2155 = vmatprep.subr.bf16.mxu0 %v2154_v32  ;;  %v1453_v32 = vld [vmem:[%s2909_s4 + $0x98] sm:$0xff]  ;;  %v2220_v35 = vpack.c.bf16 %v1435_v30, %v1434_v24  ;;  %v1236_v24 = vld [vmem:[%s2907_s2 + $0x2d0] sm:$0xff] }
 0x12f   :  { %2033 = vmatpush1.bf16.msra.mxu1 %v2032_v37  ;;  %v521_v37 = vld [vmem:[#allocation4 + $0xe98] sm:$0xff] }
 0x130   :  { %2035 = vmatprep.subr.bf16.mxu1 %v2034_v38  ;;  %v525_v38 = vld [vmem:[#allocation4 + $0xeb8] sm:$0xff] }
 0x131   :  { %v2066_v40 = vpack.c.bf16 %v525_v38, %v521_v37  ;;  %v1436_v37 = vld [vmem:[%s2909_s4 + $0x10] sm:$0xff]  ;;  %v1437_v38 = vld [vmem:[%s2909_s4 + $0x18] sm:$0xff] }
 0x133   :  { %2037 = vmatpush1.bf16.msra.mxu1 %v2036_v44  ;;  %v529_v44 = vld [vmem:[#allocation4 + $0xed8] sm:$0xff] }
 0x134   :  { %2039 = vmatprep.subr.bf16.mxu1 %v2038_v45  ;;  %v533_v45 = vld [vmem:[#allocation4 + $0xef8] sm:$0xff] }
 0x135   :  { %v2070_v47 = vpack.c.bf16 %v533_v45, %v529_v44  ;;  %v1220_v44 = vld [vmem:[%s2907_s2 + $0x250] sm:$0xff]  ;;  %v2224_v45 = vpack.c.bf16 %v1437_v38, %v1436_v37  ;;  %v1242_v38 = vld [vmem:[%s2907_s2 + $0x300] sm:$0xff] }
 0x136   :  { %v2164_v17 = vpack.c.bf16 %v1220_v44, %v1218_v43 }
 0x137   :  { %2041 = vmatpush1.bf16.msra.mxu1 %v2040_v29  ;;  %v537_v29 = vld [vmem:[#allocation4 + $0xf18] sm:$0xff] }
 0x138   :  { %2043 = vmatprep.subr.bf16.mxu1 %v2042_v50  ;;  %v541_v50 = vld [vmem:[#allocation4 + $0xf38] sm:$0xff] }
 0x139   :  { %v2074_v42 = vpack.c.bf16 %v541_v50, %v537_v29  ;;  %v1439_v29 = vld [vmem:[%s2909_s4 + $0x28] sm:$0xff]  ;;  %v1225_v50 = vld [vmem:[%s2907_s2 + $0x278] sm:$0xff] }
 0x13b   :  { %2045 = vmatpush1.bf16.msra.mxu1 %v2044_v53  ;;  %v545_v53 = vld [vmem:[#allocation4 + $0xf58] sm:$0xff] }
 0x13c   :  { %2047 = vmatprep.subr.bf16.mxu1 %v2046_v54  ;;  %v549_v54 = vld [vmem:[#allocation4 + $0xf78] sm:$0xff] }
 0x13d   :  { %v2591_v19 = vpop.f32.mrb[0].mxu1  ;;  %v2078_v16 = vpack.c.bf16 %v549_v54, %v545_v53  ;;  %v1224_v53 = vld [vmem:[%s2907_s2 + $0x270] sm:$0xff]  ;;  %v2228_v54 = vpack.c.bf16 %v1439_v29, %v1438_v49 }
 0x13e   :  { %v2593_v5 = vpop.f32.mrb[1].mxu1 }
 0x13f   :  { %2049 = vmatpush1.bf16.msra.mxu1 %v2048_v57  ;;  %v553_v57 = vld [vmem:[#allocation4 + $0xf98] sm:$0xff] }
 0x140   :  { %2051 = vmatprep.subr.bf16.mxu1 %v2050_v61  ;;  %v2082_v60 = vpack.c.bf16 %v557_v58, %v553_v57  ;;  %v552_v61 = vld [vmem:[#allocation4 + $0xf90] sm:$0xff]  ;;  %v1441_v57 = vld [vmem:[%s2909_s4 + $0x38] sm:$0xff] }
 0x141   :  { %v2084_v1 = vpack.c.bf16 %v556_v62, %v552_v61  ;;  %v1229_v58 = vld [vmem:[%s2907_s2 + $0x298] sm:$0xff]  ;;  %v2168_v61 = vpack.c.bf16 %v1224_v53, %v1222_v52  ;;  %v1226_v62 = vld [vmem:[%s2907_s2 + $0x280] sm:$0xff]  ;;  %v2232_v0 = vpack.c.bf16 %v1441_v57, %v1440_v28 }
 0x143   :  { %2053 = vmatpush1.bf16.msra.mxu1 %v2052_v6  ;;  %v2088_v6 = vpack.c.bf16 %v564_v4, %v560_v3  ;;  %v1442_v4 = vld [vmem:[%s2909_s4 + $0x40] sm:$0xff] }
 0x144   :  { %2055 = vmatprep.subr.bf16.mxu1 %v2054_v10 }
 0x147   :  { %2057 = vmatpush1.bf16.msra.mxu1 %v2056_v21  ;;  %v1221_v21 = vld [vmem:[%s2907_s2 + $0x258] sm:$0xff] }
 0x148   :  { %2059 = vmatprep.subr.bf16.mxu1 %v2058_v22  ;;  %v1450_v22 = vld [vmem:[%s2909_s4 + $0x80] sm:$0xff] }
 0x149   :  { %v2218_v27 = vpack.c.bf16 %v1451_v23, %v1450_v22  ;;  %v1234_v23 = vld [vmem:[%s2907_s2 + $0x2c0] sm:$0xff] }
 0x14b   :  { %2061 = vmatpush1.bf16.msra.mxu1 %v2060_v31  ;;  %v1452_v31 = vld [vmem:[%s2909_s4 + $0x90] sm:$0xff] }
 0x14c   :  { %2063 = vmatprep.subr.bf16.mxu1 %v2062_v34  ;;  %v2222_v36 = vpack.c.bf16 %v1453_v32, %v1452_v31  ;;  %v1238_v31 = vld [vmem:[%s2907_s2 + $0x2e0] sm:$0xff]  ;;  %v1240_v32 = vld [vmem:[%s2907_s2 + $0x2f0] sm:$0xff] }
 0x14f   :  { %2065 = vmatpush1.bf16.msra.mxu1 %v2064_v39  ;;  %v1454_v39 = vld [vmem:[%s2909_s4 + $0xa0] sm:$0xff] }
 0x150   :  { %2067 = vmatprep.subr.bf16.mxu1 %v2066_v40  ;;  %v1455_v40 = vld [vmem:[%s2909_s4 + $0xa8] sm:$0xff] }
 0x151   :  { %v2226_v48 = vpack.c.bf16 %v1455_v40, %v1454_v39  ;;  %v1244_v39 = vld [vmem:[%s2907_s2 + $0x310] sm:$0xff]  ;;  %v1247_v40 = vld [vmem:[%s2907_s2 + $0x328] sm:$0xff] }
 0x152   :  { %v2188_v43 = vpack.c.bf16 %v1244_v39, %v1242_v38 }
 0x153   :  { %2069 = vmatpush1.bf16.msra.mxu1 %v2068_v46  ;;  %v2162_v46 = vpack.c.bf16 %v1221_v21, %v1219_v20 }
 0x154   :  { %2071 = vmatprep.subr.bf16.mxu1 %v2070_v47  ;;  %v1223_v47 = vld [vmem:[%s2907_s2 + $0x268] sm:$0xff] }
 0x157   :  { %2073 = vmatpush1.bf16.msra.mxu1 %v2072_v51  ;;  %v1456_v51 = vld [vmem:[%s2909_s4 + $0xb0] sm:$0xff] }
 0x158   :  { %2075 = vmatprep.subr.bf16.mxu1 %v2074_v42  ;;  %v1457_v42 = vld [vmem:[%s2909_s4 + $0xb8] sm:$0xff] }
 0x159   :  { %v2230_v56 = vpack.c.bf16 %v1457_v42, %v1456_v51  ;;  %v1252_v51 = vld [vmem:[%s2907_s2 + $0x350] sm:$0xff]  ;;  %v1255_v42 = vld [vmem:[%s2907_s2 + $0x368] sm:$0xff] }
 0x15b   :  { %2077 = vmatpush1.bf16.msra.mxu1 %v2076_v55  ;;  %v2166_v55 = vpack.c.bf16 %v1225_v50, %v1223_v47  ;;  %v1251_v47 = vld [vmem:[%s2907_s2 + $0x348] sm:$0xff]  ;;  %v1250_v50 = vld [vmem:[%s2907_s2 + $0x340] sm:$0xff] }
 0x15c   :  { %2079 = vmatprep.subr.bf16.mxu1 %v2078_v16  ;;  %v1227_v16 = vld [vmem:[%s2907_s2 + $0x288] sm:$0xff]  ;;  %v2196_v52 = vpack.c.bf16 %v1252_v51, %v1250_v50 }
 0x15f   :  { %2081 = vmatpush1.bf16.msra.mxu1 %v2080_v59  ;;  %v1458_v59 = vld [vmem:[%s2909_s4 + $0xc0] sm:$0xff] }
 0x160   :  { %2083 = vmatprep.subr.bf16.mxu1 %v2082_v60  ;;  %v1459_v60 = vld [vmem:[%s2909_s4 + $0xc8] sm:$0xff] }
 0x161   :  { %v2234_v3 = vpack.c.bf16 %v1459_v60, %v1458_v59  ;;  %v1260_v59 = vld [vmem:[%s2907_s2 + $0x390] sm:$0xff]  ;;  %v1263_v60 = vld [vmem:[%s2907_s2 + $0x3a8] sm:$0xff] }
 0x163   :  { %2085 = vmatpush1.bf16.msra.mxu1 %v2084_v1  ;;  %v2170_v1 = vpack.c.bf16 %v1229_v58, %v1227_v16  ;;  %v1259_v16 = vld [vmem:[%s2907_s2 + $0x388] sm:$0xff]  ;;  %v1258_v58 = vld [vmem:[%s2907_s2 + $0x380] sm:$0xff] }
 0x164   :  { %2087 = vmatprep.subr.bf16.mxu1 %v2086_v2  ;;  %v1231_v2 = vld [vmem:[%s2907_s2 + $0x2a8] sm:$0xff] }
 0x167   :  { %2089 = vmatpush1.bf16.msra.mxu1 %v2088_v6  ;;  %v1443_v6 = vld [vmem:[%s2909_s4 + $0x48] sm:$0xff] }
 0x168   :  { %2219 = vmatprep.subr.bf16.mxu1 %v2218_v27  ;;  %v2236_v12 = vpack.c.bf16 %v1443_v6, %v1442_v4  ;;  %v2180_v27 = vpack.c.bf16 %v1236_v24, %v1234_v23  ;;  %v1463_v23 = vld [vmem:[%s2909_s4 + $0xe8] sm:$0xff] }
 0x16a   :  { %1128 = vmatmul.mubr.f32.vlgmr.msra.gmra.mrb[2].mxu1 %v2405_v33  ;;  %v1217_v33 = vld [vmem:[%s2907_s2 + $0x238] sm:$0xff] }
 0x16b   :  { %v2158_v26 = vpack.c.bf16 %v1217_v33, %v1215_v14  ;;  %2221 = vmatpush3.bf16.msra.mxu1 %v2220_v35  ;;  %v1232_v14 = vld [vmem:[%s2907_s2 + $0x2b0] sm:$0xff]  ;;  %v1245_v35 = vld [vmem:[%s2907_s2 + $0x318] sm:$0xff] }
 0x16c   :  { %2223 = vmatprep.subr.bf16.mxu1 %v2222_v36  ;;  %v2176_v20 = vpack.c.bf16 %v1232_v14, %v1230_v11  ;;  %v2184_v36 = vpack.c.bf16 %v1240_v32, %v1238_v31  ;;  %v1272_v14 = vld [vmem:[%s2907_s2 + $0x3f0] sm:$0xff]  ;;  %v1465_v31 = vld [vmem:[%s2909_s4 + $0xf8] sm:$0xff] }
 0x16f   :  { %2225 = vmatpush3.bf16.msra.mxu1 %v2224_v45  ;;  %v1246_v45 = vld [vmem:[%s2907_s2 + $0x320] sm:$0xff] }
 0x170   :  { %2227 = vmatprep.subr.bf16.mxu1 %v2226_v48  ;;  %v1253_v48 = vld [vmem:[%s2907_s2 + $0x358] sm:$0xff] }
 0x171   :  { %v2194_v29 = vpack.c.bf16 %v1253_v48, %v1251_v47 }
 0x173   :  { %2229 = vmatpush3.bf16.msra.mxu1 %v2228_v54  ;;  %v1254_v54 = vld [vmem:[%s2907_s2 + $0x360] sm:$0xff] }
 0x174   :  { %2231 = vmatprep.subr.bf16.mxu1 %v2230_v56  ;;  %v1261_v56 = vld [vmem:[%s2907_s2 + $0x398] sm:$0xff] }
 0x175   :  { %v2202_v57 = vpack.c.bf16 %v1261_v56, %v1259_v16 }
 0x177   :  { %2233 = vmatpush3.bf16.msra.mxu1 %v2232_v0  ;;  %v1262_v0 = vld [vmem:[%s2907_s2 + $0x3a0] sm:$0xff] }
 0x178   :  { %2235 = vmatprep.subr.bf16.mxu1 %v2234_v3  ;;  %v1269_v3 = vld [vmem:[%s2907_s2 + $0x3d8] sm:$0xff] }
 0x17b   :  { %2237 = vmatpush3.bf16.msra.mxu1 %v2236_v12 }
 0x1bf   :  { %v845_v7 = vpop.f32.mrb[0].mxu0 }
 0x1c0   :  { %v2250_v8 = vadd.f32 %v845_v7, %v2591_v19  ;;  %v847_v9 = vpop.f32.mrb[1].mxu0  ;;  %v1233_v7 = vld [vmem:[%s2907_s2 + $0x2b8] sm:$0xff] }
 0x1c1   :  { %v2251_v10 = vadd.f32 %v847_v9, %v2593_v5  ;;  %v1214_v5 = vld [vmem:[%s2907_s2 + $0x220] sm:$0xff]  ;;  %v1461_v9 = vld [vmem:[%s2909_s4 + $0xd8] sm:$0xff] }
 0x1c2   :  { %v1138_v13 = vmul.f32 0.2, %v2250_v8  ;;  %vm1134_vm0 = vcmp.ge.f32.partialorder %v2250_v8, 0.0  ;;  %v2160_v41 = vpack.c.bf16 %v1216_v15, %v1214_v5  ;;  %v1445_v5 = vld [vmem:[%s2909_s4 + $0x58] sm:$0xff]  ;;  %v1235_v15 = vld [vmem:[%s2907_s2 + $0x2c8] sm:$0xff] }
 0x1c3   :  { %v1139_v19 = vmul.f32 0.2, %v2251_v10  ;;  %vm1135_vm1 = vcmp.ge.f32.partialorder %v2251_v10, 0.0 }
 0x1c4   :  { %v1142_v34 = vsel %vm1134_vm0, %v2250_v8, %v1138_v13  ;;  %v1460_v8 = vld [vmem:[%s2909_s4 + $0xd0] sm:$0xff]  ;;  %v2174_v13 = vpack.c.bf16 %v1233_v7, %v1231_v2  ;;  %v1267_v2 = vld [vmem:[%s2907_s2 + $0x3c8] sm:$0xff]  ;;  %v1266_v7 = vld [vmem:[%s2907_s2 + $0x3c0] sm:$0xff] }
 0x1c5   :  { %v1143_v25 = vsel %vm1135_vm1, %v2251_v10, %v1139_v19  ;;  %v2172_v10 = vpack.c.bf16 %v1228_v63, %v1226_v62  ;;  %v2238_v33 = vpack.c.bf16 %v1461_v9, %v1460_v8  ;;  %v1444_v19 = vld [vmem:[%s2909_s4 + $0x50] sm:$0xff]  ;;  %v2204_v62 = vpack.c.bf16 %v1260_v59, %v1258_v58  ;;  %v1271_v9 = vld [vmem:[%s2907_s2 + $0x3e8] sm:$0xff] }
 0x1c6   :  { %1350 = vmatprep.mubr.f32.mxu0 %v1143_v25  ;;  %v2240_v21 = vpack.c.bf16 %v1445_v5, %v1444_v19  ;;  %v1239_v25 = vld [vmem:[%s2907_s2 + $0x2e8] sm:$0xff]  ;;  %v2210_v6 = vpack.c.bf16 %v1269_v3, %v1267_v2  ;;  %v1268_v8 = vld [vmem:[%s2907_s2 + $0x3d0] sm:$0xff] }
 0x1c7   :  { %1351 = vmatmul.mubr.f32.vlgmr.msra.gmra.mrb[2].mxu0 %v1142_v34  ;;  %2239 = vmatprep.subr.bf16.mxu1 %v2238_v33  ;;  %v1243_v34 = vld [vmem:[%s2907_s2 + $0x308] sm:$0xff]  ;;  %v2212_v11 = vpack.c.bf16 %v1268_v8, %v1266_v7 }
 0x1c8   :  { %2157 = vmatpush1.bf16.msra.mxu0 %v2156_v18  ;;  %v1237_v18 = vld [vmem:[%s2907_s2 + $0x2d8] sm:$0xff]  ;;  %2241 = vmatpush3.bf16.msra.mxu1 %v2240_v21  ;;  %v2186_v37 = vpack.c.bf16 %v1245_v35, %v1243_v34  ;;  %v1448_v34 = vld [vmem:[%s2909_s4 + $0x70] sm:$0xff] }
 0x1c9   :  { %2159 = vmatprep.subr.bf16.mxu0 %v2158_v26  ;;  %v2178_v22 = vpack.c.bf16 %v1237_v18, %v1235_v15  ;;  %v1241_v26 = vld [vmem:[%s2907_s2 + $0x2f8] sm:$0xff] }
 0x1ca   :  { %v2182_v30 = vpack.c.bf16 %v1241_v26, %v1239_v25  ;;  %v1446_v25 = vld [vmem:[%s2909_s4 + $0x60] sm:$0xff]  ;;  %v1447_v26 = vld [vmem:[%s2909_s4 + $0x68] sm:$0xff]  ;;  %v1449_v35 = vld [vmem:[%s2909_s4 + $0x78] sm:$0xff] }
 0x1cc   :  { %2161 = vmatpush1.bf16.msra.mxu0 %v2160_v41  ;;  %v1249_v41 = vld [vmem:[%s2907_s2 + $0x338] sm:$0xff] }
 0x1cd   :  { %2163 = vmatprep.subr.bf16.mxu0 %v2162_v46  ;;  %v2190_v44 = vpack.c.bf16 %v1249_v41, %v1247_v40  ;;  %v1248_v46 = vld [vmem:[%s2907_s2 + $0x330] sm:$0xff]  ;;  %v1274_v40 = vld [vmem:[%s2908_s3] sm:$0x3] }
 0x1ce   :  { %v2192_v49 = vpack.c.bf16 %v1248_v46, %v1246_v45 }
 0x1d0   :  { %2165 = vmatpush1.bf16.msra.mxu0 %v2164_v17  ;;  %v1257_v17 = vld [vmem:[%s2907_s2 + $0x378] sm:$0xff] }
 0x1d1   :  { %2167 = vmatprep.subr.bf16.mxu0 %v2166_v55  ;;  %v2198_v53 = vpack.c.bf16 %v1257_v17, %v1255_v42  ;;  %v1256_v55 = vld [vmem:[%s2907_s2 + $0x370] sm:$0xff] }
 0x1d2   :  { %v2200_v28 = vpack.c.bf16 %v1256_v55, %v1254_v54 }
 0x1d4   :  { %2169 = vmatpush1.bf16.msra.mxu0 %v2168_v61  ;;  %v1265_v61 = vld [vmem:[%s2907_s2 + $0x3b8] sm:$0xff] }
 0x1d5   :  { %2171 = vmatprep.subr.bf16.mxu0 %v2170_v1  ;;  %v2206_v63 = vpack.c.bf16 %v1265_v61, %v1263_v60  ;;  %v1264_v1 = vld [vmem:[%s2907_s2 + $0x3b0] sm:$0xff] }
 0x1d6   :  { %v2208_v4 = vpack.c.bf16 %v1264_v1, %v1262_v0 }
 0x1d8   :  { %2173 = vmatpush1.bf16.msra.mxu0 %v2172_v10  ;;  %v1273_v10 = vld [vmem:[%s2907_s2 + $0x3f8] sm:$0xff] }
 0x1d9   :  { %2175 = vmatprep.subr.bf16.mxu0 %v2174_v13  ;;  %v2214_v12 = vpack.c.bf16 %v1273_v10, %v1271_v9  ;;  %v1270_v13 = vld [vmem:[%s2907_s2 + $0x3e0] sm:$0xff] }
 0x1da   :  { %v2216_v33 = vpack.c.bf16 %v1272_v14, %v1270_v13 }
 0x1dc   :  { %2177 = vmatpush1.bf16.msra.mxu0 %v2176_v20 }
 0x1dd   :  { %2179 = vmatprep.subr.bf16.mxu0 %v2178_v22  ;;  %v1462_v22 = vld [vmem:[%s2909_s4 + $0xe0] sm:$0xff] }
 0x1de   :  { %v2242_v24 = vpack.c.bf16 %v1463_v23, %v1462_v22 }
 0x1e0   :  { %2181 = vmatpush1.bf16.msra.mxu0 %v2180_v27  ;;  %v2244_v27 = vpack.c.bf16 %v1447_v26, %v1446_v25  ;;  %2243 = vmatprep.subr.bf16.mxu1 %v2242_v24 }
 0x1e1   :  { %2183 = vmatprep.subr.bf16.mxu0 %v2182_v30  ;;  %v1464_v30 = vld [vmem:[%s2909_s4 + $0xf0] sm:$0xff] }
 0x1e2   :  { %2245 = vmatpush3.bf16.msra.mxu1 %v2244_v27  ;;  %v2246_v32 = vpack.c.bf16 %v1465_v31, %v1464_v30 }
 0x1e4   :  { %2185 = vmatpush1.bf16.msra.mxu0 %v2184_v36  ;;  %v2248_v36 = vpack.c.bf16 %v1449_v35, %v1448_v34  ;;  %2247 = vmatprep.subr.bf16.mxu1 %v2246_v32 }
 0x1e5   :  { %2187 = vmatprep.subr.bf16.mxu0 %v2186_v37  ;;  %v1276_v37 = vlaneseq }
 0x1e6   :  { %2249 = vmatpush3.bf16.msra.mxu1 %v2248_v36 }
 0x1e7   :  { %v1277_v38 = vshrl.u32 %v1276_v37, 7 }
 0x1e8   :  { %2189 = vmatpush1.bf16.msra.mxu0 %v2188_v43 }
 0x1e9   :  { %2191 = vmatprep.subr.bf16.mxu0 %v2190_v44  ;;  %v1278_v39 = vsub.s32 0, %v1277_v38  ;;  %v1282_v41 = vsub.s32 1, %v1277_v38 }
 0x1eb   :  { %v1279_v43 = vrot.slane %v1274_v40, %v1278_v39  ;;  %v1283_v44 = vrot.slane %v1274_v40, %v1282_v41 }
 0x1ec   :  { %2193 = vmatpush1.bf16.msra.mxu0 %v2192_v49 }
 0x1ed   :  { %2195 = vmatprep.subr.bf16.mxu0 %v2194_v29 }
 0x1f0   :  { %2197 = vmatpush1.bf16.msra.mxu0 %v2196_v52 }
 0x1f1   :  { %2199 = vmatprep.subr.bf16.mxu0 %v2198_v53 }
 0x1f4   :  { %2201 = vmatpush1.bf16.msra.mxu0 %v2200_v28 }
 0x1f5   :  { %2203 = vmatprep.subr.bf16.mxu0 %v2202_v57 }
 0x1f8   :  { %2205 = vmatpush1.bf16.msra.mxu0 %v2204_v62 }
 0x1f9   :  { %2207 = vmatprep.subr.bf16.mxu0 %v2206_v63 }
 0x1fc   :  { %2209 = vmatpush1.bf16.msra.mxu0 %v2208_v4 }
 0x1fd   :  { %2211 = vmatprep.subr.bf16.mxu0 %v2210_v6 }
 0x200   :  { %2213 = vmatpush1.bf16.msra.mxu0 %v2212_v11 }
 0x201   :  { %2215 = vmatprep.subr.bf16.mxu0 %v2214_v12 }
 0x204   :  { %2217 = vmatpush1.bf16.msra.mxu0 %v2216_v33 }
 0x23d   :  { %v1129_v19 = vpop.f32.mrb[2].mxu1 }
 0x23e   :  { %v1140_v5 = vmul.f32 0.2, %v1129_v19  ;;  %v1131_v15 = vpop.f32.mrb[3].mxu1  ;;  %vm1136_vm2 = vcmp.ge.f32.partialorder %v1129_v19, 0.0 }
 0x23f   :  { %vm1137_vm3 = vcmp.ge.f32.partialorder %v1131_v15, 0.0  ;;  %v1141_v18 = vmul.f32 0.2, %v1131_v15 }
 0x240   :  { %v1144_v21 = vsel %vm1136_vm2, %v1129_v19, %v1140_v5 }
 0x241   :  { %v1145_v20 = vsel %vm1137_vm3, %v1131_v15, %v1141_v18 }
 0x242   :  { %1421 = vmatprep.mubr.f32.mxu0 %v1145_v20 }
 0x243   :  { %1422 = vmatmul.mubr.f32.vlgmr.msra.gmra.mrb[2].mxu0 %v1144_v21 }
 0x316   :  { %v1423_v45 = vpop.f32.mrb[2].mxu0 }
 0x317   :  { %v2252_v46 = vadd.f32 %v1423_v45, %v1279_v43  ;;  %v1425_v47 = vpop.f32.mrb[3].mxu0 }
 0x318   :  { %v2253_v48 = vadd.f32 %v1425_v47, %v1283_v44 }
 0x319   :  { %v1430_v49 = vmul.f32 0.2, %v2252_v46  ;;  %vm1428_vm4 = vcmp.ge.f32.partialorder %v2252_v46, 0.0 }
 0x31a   :  { %v1431_v29 = vmul.f32 0.2, %v2253_v48  ;;  %vm1429_vm5 = vcmp.ge.f32.partialorder %v2253_v48, 0.0 }
 0x31b   :  { %v1432_v51 = vsel %vm1428_vm4, %v2252_v46, %v1430_v49 }
 0x31c   :  { %v1433_v50 = vsel %vm1429_vm5, %v2253_v48, %v1431_v29 }
 0x31d   :  { %1530 = vmatprep.mubr.f32.mxu1 %v1433_v50 }
 0x31e   :  { %1531 = vmatmul.mubr.f32.vlgmr.msra.gmra.mrb[4].mxu1 %v1432_v51 }
 0x3f1   :  { %v1575_v42 = vpop.f32.mrb[4].mxu1 }
 0x3f2   :  { %v1576_v17 = vpop.f32.mrb[5].mxu1 }
 0x3f3   :  { %v1577_v52 = vadd.f32 %v1576_v17, %v1575_v42 }
 0x3f5   :  { %1536 = vst [vmem:[%s2910_s5] sm:$0xff] %v1577_v52 }
 0x3f6   :  { %1541 = vsyncpa [#allocation3], 1 }
 0x3f7   :  { %1542 = vsyncpa [#allocation5], 1 }

</bundles_post_ra>
